<compile_context>
chip_gen: v7x
topology: tpu7x:2x2x1
jax: 0.10.0
libtpu: 0.0.40
codegen_flags: <defaults>
</compile_context>

<pallas_src>
import math

import jax
import jax.numpy as jnp
from jax.experimental import pallas as pl
from jax.experimental.pallas import tpu as pltpu

# ---------------- config (small, synthetic) ----------------
VOCAB = 128
MAX_POS = 32
TYPE_VOCAB = 2
HIDDEN = 32           # args.bert_hidden_size
NUM_LAYERS = 2
NUM_HEADS = 4
HEAD_DIM = HIDDEN // NUM_HEADS
INTERMEDIATE = 64
NUM_LABELS = 3        # args.num_labels
LN_EPS = 1e-12

H_PAD = 128           # lane-dense working width (hidden / intermediate / logits padded)


# ---------------- fused Pallas kernel (whole forward) ----------------
def _fused_bert_kernel(
    emb_ref, bias_ref, colmask_ref, headmask_ref, clssel_ref,
    embg_ref, embb_ref,
    wqkv_ref, bqkv_ref, wo_ref, bo_ref, ln1g_ref, ln1b_ref,
    w1_ref, b1_ref, w2_ref, b2_ref, ln2g_ref, ln2b_ref,
    clsw_ref, clsb_ref,
    out_ref,
):
    f32 = jnp.float32
    bf16 = jnp.bfloat16

    col_mask = colmask_ref[...]                  # (1, H_PAD), 1.0 on the real 32 cols
    inv_h = 1.0 / HIDDEN
    scale = 1.0 / math.sqrt(HEAD_DIM)

    def layernorm(x, g, b):
        # masked statistics: only the HIDDEN real columns count (pad cols are zero)
        mu = jnp.sum(x, axis=-1, keepdims=True) * inv_h
        xc = (x - mu) * col_mask
        var = jnp.sum(xc * xc, axis=-1, keepdims=True) * inv_h
        return xc * jax.lax.rsqrt(var + LN_EPS) * g + b

    def mm(x, w_bf16):                           # bf16 MXU operands, f32 accumulate
        return jnp.dot(x.astype(bf16), w_bf16, preferred_element_type=f32)

    h = layernorm(emb_ref[...], embg_ref[...], embb_ref[...])   # (B*S, H_PAD) f32
    bias = bias_ref[...]                                        # (B*S, B*S) additive

    for l in range(NUM_LAYERS):
        # fused QKV projection: one (B*S,128)@(128,384) matmul, vreg-aligned split
        qkv = mm(h, wqkv_ref[l]) + bqkv_ref[l]                  # (B*S, 3*H_PAD)
        q = qkv[:, 0 * H_PAD:1 * H_PAD]
        k = qkv[:, 1 * H_PAD:2 * H_PAD]
        v = qkv[:, 2 * H_PAD:3 * H_PAD]
        kb = k.astype(bf16)

        ctx = jnp.zeros_like(q)                                 # (B*S, H_PAD) f32
        for hh in range(NUM_HEADS):
            hm = headmask_ref[hh]                               # (1, H_PAD)
            qh = (q * hm).astype(bf16)
            # scores_h = (Q*mask) @ K^T  (contraction over 128 lanes)
            s = jax.lax.dot_general(qh, kb, (((1,), (1,)), ((), ())),
                                    preferred_element_type=f32)  # (B*S, B*S)
            s = s * scale + bias
            s = s - jnp.max(s, axis=-1, keepdims=True)
            p = jnp.exp(s)
            p = p * pl.reciprocal(jnp.sum(p, axis=-1, keepdims=True), approx=True)
            vh = (v * hm).astype(bf16)
            ctx = ctx + jnp.dot(p.astype(bf16), vh, preferred_element_type=f32)

        attn_out = mm(ctx, wo_ref[l]) + bo_ref[l]
        h = layernorm(h + attn_out, ln1g_ref[l], ln1b_ref[l])

        ff = mm(h, w1_ref[l]) + b1_ref[l]
        # TODO(synk): HF BERT's default 'gelu' is the exact erf form; tanh approximation used here.
        ff = 0.5 * ff * (1.0 + jnp.tanh(0.7978845608028654 * (ff + 0.044715 * ff * ff * ff)))
        ff = mm(ff, w2_ref[l]) + b2_ref[l]
        h = layernorm(h + ff, ln2g_ref[l], ln2b_ref[l])

    # CLS selection (rows 0, S, 2S, ...) as a tiny selection matmul, fused classifier
    cls = jnp.dot(clssel_ref[...].astype(bf16), h.astype(bf16),
                  preferred_element_type=f32)                   # (B, H_PAD)
    out_ref[...] = mm(cls, clsw_ref[...]) + clsb_ref[...]       # (B, H_PAD) lane-dense


# ---------------- deterministic parameter init (synthetic BERT) ----------------
def init_params(key):
    def nrm(k, shape, std=0.02):
        return (std * jax.random.normal(k, shape)).astype(jnp.float32)

    keys = iter(jax.random.split(key, 16 + NUM_LAYERS * 16))
    params = {
        "word_emb": nrm(next(keys), (VOCAB, HIDDEN)),
        "pos_emb": nrm(next(keys), (MAX_POS, HIDDEN)),
        "type_emb": nrm(next(keys), (TYPE_VOCAB, HIDDEN)),
        "emb_ln_g": jnp.ones((HIDDEN,), jnp.float32),
        "emb_ln_b": jnp.zeros((HIDDEN,), jnp.float32),
        "cls_w": nrm(next(keys), (HIDDEN, NUM_LABELS)),
        "cls_b": jnp.zeros((NUM_LABELS,), jnp.float32),
        "layers": [],
    }
    for _ in range(NUM_LAYERS):
        layer = {
            "wq": nrm(next(keys), (HIDDEN, HIDDEN)), "bq": jnp.zeros((HIDDEN,), jnp.float32),
            "wk": nrm(next(keys), (HIDDEN, HIDDEN)), "bk": jnp.zeros((HIDDEN,), jnp.float32),
            "wv": nrm(next(keys), (HIDDEN, HIDDEN)), "bv": jnp.zeros((HIDDEN,), jnp.float32),
            "wo": nrm(next(keys), (HIDDEN, HIDDEN)), "bo": jnp.zeros((HIDDEN,), jnp.float32),
            "ln1_g": jnp.ones((HIDDEN,), jnp.float32), "ln1_b": jnp.zeros((HIDDEN,), jnp.float32),
            "w1": nrm(next(keys), (HIDDEN, INTERMEDIATE)), "b1": jnp.zeros((INTERMEDIATE,), jnp.float32),
            "w2": nrm(next(keys), (INTERMEDIATE, HIDDEN)), "b2": jnp.zeros((HIDDEN,), jnp.float32),
            "ln2_g": jnp.ones((HIDDEN,), jnp.float32), "ln2_b": jnp.zeros((HIDDEN,), jnp.float32),
        }
        params["layers"].append(layer)
    return params


def pack_params(p):
    """Pad / stack raw BERT-style params into the kernel's lane-dense 128-wide layout."""
    def pad_to(a, shape):
        out = jnp.zeros(shape, jnp.float32)
        return out.at[tuple(slice(0, s) for s in a.shape)].set(a)

    wqkv, bqkv, wo, bo, ln1g, ln1b, w1, b1, w2, b2, ln2g, ln2b = ([] for _ in range(12))
    for layer in p["layers"]:
        w3 = jnp.zeros((H_PAD, 3 * H_PAD), jnp.float32)
        w3 = w3.at[:HIDDEN, 0 * H_PAD:0 * H_PAD + HIDDEN].set(layer["wq"])
        w3 = w3.at[:HIDDEN, 1 * H_PAD:1 * H_PAD + HIDDEN].set(layer["wk"])
        w3 = w3.at[:HIDDEN, 2 * H_PAD:2 * H_PAD + HIDDEN].set(layer["wv"])
        wqkv.append(w3)
        b3 = jnp.zeros((1, 3 * H_PAD), jnp.float32)
        b3 = b3.at[0, 0 * H_PAD:0 * H_PAD + HIDDEN].set(layer["bq"])
        b3 = b3.at[0, 1 * H_PAD:1 * H_PAD + HIDDEN].set(layer["bk"])
        b3 = b3.at[0, 2 * H_PAD:2 * H_PAD + HIDDEN].set(layer["bv"])
        bqkv.append(b3)
        wo.append(pad_to(layer["wo"], (H_PAD, H_PAD)))
        bo.append(pad_to(layer["bo"][None, :], (1, H_PAD)))
        ln1g.append(pad_to(layer["ln1_g"][None, :], (1, H_PAD)))
        ln1b.append(pad_to(layer["ln1_b"][None, :], (1, H_PAD)))
        w1.append(pad_to(layer["w1"], (H_PAD, H_PAD)))
        b1.append(pad_to(layer["b1"][None, :], (1, H_PAD)))
        w2.append(pad_to(layer["w2"], (H_PAD, H_PAD)))
        b2.append(pad_to(layer["b2"][None, :], (1, H_PAD)))
        ln2g.append(pad_to(layer["ln2_g"][None, :], (1, H_PAD)))
        ln2b.append(pad_to(layer["ln2_b"][None, :], (1, H_PAD)))

    return {
        "word_emb": p["word_emb"], "pos_emb": p["pos_emb"], "type_emb": p["type_emb"],
        "emb_ln_g": pad_to(p["emb_ln_g"][None, :], (1, H_PAD)),
        "emb_ln_b": pad_to(p["emb_ln_b"][None, :], (1, H_PAD)),
        "wqkv": jnp.stack(wqkv).astype(jnp.bfloat16),
        "bqkv": jnp.stack(bqkv),
        "wo": jnp.stack(wo).astype(jnp.bfloat16),
        "bo": jnp.stack(bo),
        "ln1_g": jnp.stack(ln1g), "ln1_b": jnp.stack(ln1b),
        "w1": jnp.stack(w1).astype(jnp.bfloat16), "b1": jnp.stack(b1),
        "w2": jnp.stack(w2).astype(jnp.bfloat16), "b2": jnp.stack(b2),
        "ln2_g": jnp.stack(ln2g), "ln2_b": jnp.stack(ln2b),
        "cls_w": pad_to(p["cls_w"], (H_PAD, H_PAD)).astype(jnp.bfloat16),
        "cls_b": pad_to(p["cls_b"][None, :], (1, H_PAD)),
    }


def _full_spec(shape):
    zeros = (0,) * len(shape)
    return pl.BlockSpec(shape, lambda i: zeros)


# ---------------- forward: embedding gathers in XLA glue, everything else fused ----------------
@jax.jit
def knowledge_selector_forward(packed, input_ids, token_type_ids, attention_mask):
    B, S = input_ids.shape
    BS = B * S

    # Embedding lookups (gathers stay in XLA glue; no clean Pallas gather needed at this size)
    pos_ids = jnp.arange(S, dtype=jnp.int32)[None, :]
    emb = (jnp.take(packed["word_emb"], input_ids, axis=0)
           + jnp.take(packed["pos_emb"], pos_ids, axis=0)
           + jnp.take(packed["type_emb"], token_type_ids, axis=0))          # (B, S, HIDDEN)
    emb = jnp.pad(emb.reshape(BS, HIDDEN), ((0, 0), (0, H_PAD - HIDDEN)))   # (BS, H_PAD)

    # Additive attention bias: BERT key-padding mask within a batch, -1e9 across batches
    batch_ids = jnp.arange(BS, dtype=jnp.int32) // S
    same_batch = batch_ids[:, None] == batch_ids[None, :]
    key_pad = (1.0 - attention_mask.astype(jnp.float32)).reshape(BS) * -10000.0
    attn_bias = jnp.where(same_batch, key_pad[None, :], jnp.float32(-1e9))  # (BS, BS)

    # Constant helper tensors (folded by jit)
    lane = jnp.arange(H_PAD)
    col_mask = (lane < HIDDEN).astype(jnp.float32)[None, :]                 # (1, H_PAD)
    head_masks = jnp.stack(
        [((lane >= hh * HEAD_DIM) & (lane < (hh + 1) * HEAD_DIM))
         .astype(jnp.float32)[None, :] for hh in range(NUM_HEADS)], axis=0)  # (NH, 1, H_PAD)
    cls_sel = jnp.zeros((B, BS), jnp.float32).at[
        jnp.arange(B), jnp.arange(B) * S].set(1.0)                          # (B, BS)

    inputs = (
        emb, attn_bias, col_mask, head_masks, cls_sel,
        packed["emb_ln_g"], packed["emb_ln_b"],
        packed["wqkv"], packed["bqkv"], packed["wo"], packed["bo"],
        packed["ln1_g"], packed["ln1_b"],
        packed["w1"], packed["b1"], packed["w2"], packed["b2"],
        packed["ln2_g"], packed["ln2_b"],
        packed["cls_w"], packed["cls_b"],
    )

    logits_pad = pl.pallas_call(
        _fused_bert_kernel,
        out_shape=jax.ShapeDtypeStruct((B, H_PAD), jnp.float32),
        grid=(1,),
        in_specs=[_full_spec(a.shape) for a in inputs],
        out_specs=_full_spec((B, H_PAD)),
        compiler_params=pltpu.CompilerParams(dimension_semantics=("arbitrary",)),
    )(*inputs)

    return logits_pad[:, :NUM_LABELS]


if __name__ == "__main__":
    master = jax.random.PRNGKey(0)
    kp, k1, k2 = jax.random.split(master, 3)
    packed = pack_params(init_params(kp))

    B, S = 2, 8
    input_ids = jax.random.randint(k1, (B, S), 0, VOCAB, dtype=jnp.int32)
    token_type_ids = jnp.zeros((B, S), dtype=jnp.int32).at[:, S // 2:].set(1)
    attention_mask = jnp.ones((B, S), dtype=jnp.int32).at[1, S - 2:].set(0)

    logits = knowledge_selector_forward(packed, input_ids, token_type_ids, attention_mask)
    jax.block_until_ready(logits)
    assert logits.shape == (B, NUM_LABELS)
    print("KERNEL_OK")
</pallas_src>

<mosaic_0001>
module attributes {stable_mosaic.version = 11 : i64} {
  func.func @_fused_bert_kernel(%arg0: i32, %arg1: memref<16x128xf32, #tpu.memory_space<vmem>>, %arg2: memref<16x16xf32, #tpu.memory_space<vmem>>, %arg3: memref<1x128xf32, #tpu.memory_space<vmem>>, %arg4: memref<4x1x128xf32, #tpu.memory_space<vmem>>, %arg5: memref<2x16xf32, #tpu.memory_space<vmem>>, %arg6: memref<1x128xf32, #tpu.memory_space<vmem>>, %arg7: memref<1x128xf32, #tpu.memory_space<vmem>>, %arg8: memref<2x128x384xbf16, #tpu.memory_space<vmem>>, %arg9: memref<2x1x384xf32, #tpu.memory_space<vmem>>, %arg10: memref<2x128x128xbf16, #tpu.memory_space<vmem>>, %arg11: memref<2x1x128xf32, #tpu.memory_space<vmem>>, %arg12: memref<2x1x128xf32, #tpu.memory_space<vmem>>, %arg13: memref<2x1x128xf32, #tpu.memory_space<vmem>>, %arg14: memref<2x128x128xbf16, #tpu.memory_space<vmem>>, %arg15: memref<2x1x128xf32, #tpu.memory_space<vmem>>, %arg16: memref<2x128x128xbf16, #tpu.memory_space<vmem>>, %arg17: memref<2x1x128xf32, #tpu.memory_space<vmem>>, %arg18: memref<2x1x128xf32, #tpu.memory_space<vmem>>, %arg19: memref<2x1x128xf32, #tpu.memory_space<vmem>>, %arg20: memref<128x128xbf16, #tpu.memory_space<vmem>>, %arg21: memref<1x128xf32, #tpu.memory_space<vmem>>, %arg22: memref<2x128xf32, #tpu.memory_space<vmem>>) attributes {dimension_semantics = [#tpu.dimension_semantics<arbitrary>], iteration_bounds = array<i64: 1>, scalar_prefetch = 0 : i64, scratch_operands = 0 : i64, tpu.core_type = #tpu.core_type<tc>, window_params = [{pipeline_mode = #tpu.pipeline_mode<synchronous>, transform_indices = @transform_0, window_bounds = array<i64: 16, 128>}, {pipeline_mode = #tpu.pipeline_mode<synchronous>, transform_indices = @transform_1, window_bounds = array<i64: 16, 16>}, {pipeline_mode = #tpu.pipeline_mode<synchronous>, transform_indices = @transform_2, window_bounds = array<i64: 1, 128>}, {pipeline_mode = #tpu.pipeline_mode<synchronous>, transform_indices = @transform_3, window_bounds = array<i64: 4, 1, 128>}, {pipeline_mode = #tpu.pipeline_mode<synchronous>, transform_indices = @transform_4, window_bounds = array<i64: 2, 16>}, {pipeline_mode = #tpu.pipeline_mode<synchronous>, transform_indices = @transform_5, window_bounds = array<i64: 1, 128>}, {pipeline_mode = #tpu.pipeline_mode<synchronous>, transform_indices = @transform_6, window_bounds = array<i64: 1, 128>}, {pipeline_mode = #tpu.pipeline_mode<synchronous>, transform_indices = @transform_7, window_bounds = array<i64: 2, 128, 384>}, {pipeline_mode = #tpu.pipeline_mode<synchronous>, transform_indices = @transform_8, window_bounds = array<i64: 2, 1, 384>}, {pipeline_mode = #tpu.pipeline_mode<synchronous>, transform_indices = @transform_9, window_bounds = array<i64: 2, 128, 128>}, {pipeline_mode = #tpu.pipeline_mode<synchronous>, transform_indices = @transform_10, window_bounds = array<i64: 2, 1, 128>}, {pipeline_mode = #tpu.pipeline_mode<synchronous>, transform_indices = @transform_11, window_bounds = array<i64: 2, 1, 128>}, {pipeline_mode = #tpu.pipeline_mode<synchronous>, transform_indices = @transform_12, window_bounds = array<i64: 2, 1, 128>}, {pipeline_mode = #tpu.pipeline_mode<synchronous>, transform_indices = @transform_13, window_bounds = array<i64: 2, 128, 128>}, {pipeline_mode = #tpu.pipeline_mode<synchronous>, transform_indices = @transform_14, window_bounds = array<i64: 2, 1, 128>}, {pipeline_mode = #tpu.pipeline_mode<synchronous>, transform_indices = @transform_15, window_bounds = array<i64: 2, 128, 128>}, {pipeline_mode = #tpu.pipeline_mode<synchronous>, transform_indices = @transform_16, window_bounds = array<i64: 2, 1, 128>}, {pipeline_mode = #tpu.pipeline_mode<synchronous>, transform_indices = @transform_17, window_bounds = array<i64: 2, 1, 128>}, {pipeline_mode = #tpu.pipeline_mode<synchronous>, transform_indices = @transform_18, window_bounds = array<i64: 2, 1, 128>}, {pipeline_mode = #tpu.pipeline_mode<synchronous>, transform_indices = @transform_19, window_bounds = array<i64: 128, 128>}, {pipeline_mode = #tpu.pipeline_mode<synchronous>, transform_indices = @transform_20, window_bounds = array<i64: 1, 128>}, {pipeline_mode = #tpu.pipeline_mode<synchronous>, transform_indices = @transform_21, window_bounds = array<i64: 2, 128>}]} {
    %c0 = arith.constant 0 : index
    %c0_0 = arith.constant 0 : index
    %0 = vector.load %arg3[%c0, %c0_0] : memref<1x128xf32, #tpu.memory_space<vmem>>, vector<1x128xf32>
    %c0_1 = arith.constant 0 : index
    %c0_2 = arith.constant 0 : index
    %1 = vector.load %arg1[%c0_1, %c0_2] : memref<16x128xf32, #tpu.memory_space<vmem>>, vector<16x128xf32>
    %c0_3 = arith.constant 0 : index
    %c0_4 = arith.constant 0 : index
    %2 = vector.load %arg6[%c0_3, %c0_4] : memref<1x128xf32, #tpu.memory_space<vmem>>, vector<1x128xf32>
    %c0_5 = arith.constant 0 : index
    %c0_6 = arith.constant 0 : index
    %3 = vector.load %arg7[%c0_5, %c0_6] : memref<1x128xf32, #tpu.memory_space<vmem>>, vector<1x128xf32>
    %cst = arith.constant dense<0.000000e+00> : vector<16xf32>
    %4 = vector.multi_reduction <add>, %1, %cst [1] : vector<16x128xf32> to vector<16xf32>
    %5 = vector.shape_cast %4 : vector<16xf32> to vector<16x1xf32>
    %cst_7 = arith.constant 3.125000e-02 : f32
    %6 = vector.broadcast %cst_7 : f32 to vector<16x1xf32>
    %7 = arith.mulf %5, %6 : vector<16x1xf32>
    %8 = vector.broadcast %7 : vector<16x1xf32> to vector<16x128xf32>
    %9 = arith.subf %1, %8 : vector<16x128xf32>
    %10 = vector.broadcast %0 : vector<1x128xf32> to vector<16x128xf32>
    %11 = arith.mulf %9, %10 : vector<16x128xf32>
    %12 = arith.mulf %11, %11 : vector<16x128xf32>
    %cst_8 = arith.constant dense<0.000000e+00> : vector<16xf32>
    %13 = vector.multi_reduction <add>, %12, %cst_8 [1] : vector<16x128xf32> to vector<16xf32>
    %14 = vector.shape_cast %13 : vector<16xf32> to vector<16x1xf32>
    %cst_9 = arith.constant 3.125000e-02 : f32
    %15 = vector.broadcast %cst_9 : f32 to vector<16x1xf32>
    %16 = arith.mulf %14, %15 : vector<16x1xf32>
    %cst_10 = arith.constant 9.99999996E-13 : f32
    %17 = vector.broadcast %cst_10 : f32 to vector<16x1xf32>
    %18 = arith.addf %16, %17 : vector<16x1xf32>
    %19 = math.rsqrt %18 : vector<16x1xf32>
    %20 = vector.broadcast %19 : vector<16x1xf32> to vector<16x128xf32>
    %21 = arith.mulf %11, %20 : vector<16x128xf32>
    %22 = vector.broadcast %2 : vector<1x128xf32> to vector<16x128xf32>
    %23 = arith.mulf %21, %22 : vector<16x128xf32>
    %24 = vector.broadcast %3 : vector<1x128xf32> to vector<16x128xf32>
    %25 = arith.addf %23, %24 : vector<16x128xf32>
    %c0_11 = arith.constant 0 : index
    %c0_12 = arith.constant 0 : index
    %26 = vector.load %arg2[%c0_11, %c0_12] : memref<16x16xf32, #tpu.memory_space<vmem>>, vector<16x16xf32>
    %c0_13 = arith.constant 0 : index
    %c0_14 = arith.constant 0 : index
    %c0_15 = arith.constant 0 : index
    %27 = vector.load %arg8[%c0_13, %c0_14, %c0_15] : memref<2x128x384xbf16, #tpu.memory_space<vmem>>, vector<1x128x384xbf16>
    %28 = vector.shape_cast %27 : vector<1x128x384xbf16> to vector<128x384xbf16>
    %29 = arith.truncf %25 : vector<16x128xf32> to vector<16x128xbf16>
    %cst_16 = arith.constant dense<0.000000e+00> : vector<16x384xf32>
    %30 = tpu.matmul %29, %28, %cst_16 {dimension_numbers = #tpu.dot_dimension_numbers<[1], [0], [0], [1], [0, 0, 1, 1], [], []>} : vector<16x128xbf16>, vector<128x384xbf16>, vector<16x384xf32> -> vector<16x384xf32>
    %c0_17 = arith.constant 0 : index
    %c0_18 = arith.constant 0 : index
    %c0_19 = arith.constant 0 : index
    %31 = vector.load %arg9[%c0_17, %c0_18, %c0_19] : memref<2x1x384xf32, #tpu.memory_space<vmem>>, vector<1x1x384xf32>
    %32 = vector.shape_cast %31 : vector<1x1x384xf32> to vector<1x384xf32>
    %33 = vector.broadcast %32 : vector<1x384xf32> to vector<16x384xf32>
    %34 = arith.addf %30, %33 : vector<16x384xf32>
    %35 = vector.extract_strided_slice %34 {offsets = [0, 0], sizes = [16, 128], strides = [1, 1]} : vector<16x384xf32> to vector<16x128xf32>
    %36 = vector.extract_strided_slice %34 {offsets = [0, 128], sizes = [16, 128], strides = [1, 1]} : vector<16x384xf32> to vector<16x128xf32>
    %37 = vector.extract_strided_slice %34 {offsets = [0, 256], sizes = [16, 128], strides = [1, 1]} : vector<16x384xf32> to vector<16x128xf32>
    %38 = arith.truncf %36 : vector<16x128xf32> to vector<16x128xbf16>
    %cst_20 = arith.constant 0.000000e+00 : f32
    %39 = vector.broadcast %cst_20 : f32 to vector<16x128xf32>
    %c0_21 = arith.constant 0 : index
    %c0_22 = arith.constant 0 : index
    %c0_23 = arith.constant 0 : index
    %40 = vector.load %arg4[%c0_21, %c0_22, %c0_23] : memref<4x1x128xf32, #tpu.memory_space<vmem>>, vector<1x1x128xf32>
    %41 = vector.shape_cast %40 : vector<1x1x128xf32> to vector<1x128xf32>
    %42 = vector.broadcast %41 : vector<1x128xf32> to vector<16x128xf32>
    %43 = arith.mulf %35, %42 : vector<16x128xf32>
    %44 = arith.truncf %43 : vector<16x128xf32> to vector<16x128xbf16>
    %cst_24 = arith.constant dense<0.000000e+00> : vector<16x16xf32>
    %45 = tpu.matmul %44, %38, %cst_24 {dimension_numbers = #tpu.dot_dimension_numbers<[1], [1], [0], [0], [0, 0, 1, 0], [], []>} : vector<16x128xbf16>, vector<16x128xbf16>, vector<16x16xf32> -> vector<16x16xf32>
    %cst_25 = arith.constant 0.353553385 : f32
    %46 = vector.broadcast %cst_25 : f32 to vector<16x16xf32>
    %47 = arith.mulf %45, %46 : vector<16x16xf32>
    %48 = arith.addf %47, %26 : vector<16x16xf32>
    %cst_26 = arith.constant dense<0xFF800000> : vector<16xf32>
    %49 = vector.multi_reduction <maximumf>, %48, %cst_26 [1] : vector<16x16xf32> to vector<16xf32>
    %50 = vector.shape_cast %49 : vector<16xf32> to vector<16x1xf32>
    %51 = vector.broadcast %50 : vector<16x1xf32> to vector<16x16xf32>
    %52 = arith.subf %48, %51 : vector<16x16xf32>
    %53 = math.exp %52 : vector<16x16xf32>
    %cst_27 = arith.constant dense<0.000000e+00> : vector<16xf32>
    %54 = vector.multi_reduction <add>, %53, %cst_27 [1] : vector<16x16xf32> to vector<16xf32>
    %55 = vector.shape_cast %54 : vector<16xf32> to vector<16x1xf32>
    %56 = tpu.reciprocal %55 {approx = true} : vector<16x1xf32> -> vector<16x1xf32>
    %57 = vector.broadcast %56 : vector<16x1xf32> to vector<16x16xf32>
    %58 = arith.mulf %53, %57 : vector<16x16xf32>
    %59 = vector.broadcast %41 : vector<1x128xf32> to vector<16x128xf32>
    %60 = arith.mulf %37, %59 : vector<16x128xf32>
    %61 = arith.truncf %60 : vector<16x128xf32> to vector<16x128xbf16>
    %62 = arith.truncf %58 : vector<16x16xf32> to vector<16x16xbf16>
    %cst_28 = arith.constant dense<0.000000e+00> : vector<16x128xf32>
    %63 = tpu.matmul %62, %61, %cst_28 {dimension_numbers = #tpu.dot_dimension_numbers<[1], [0], [0], [1], [0, 0, 1, 1], [], []>} : vector<16x16xbf16>, vector<16x128xbf16>, vector<16x128xf32> -> vector<16x128xf32>
    %64 = arith.addf %39, %63 : vector<16x128xf32>
    %c1 = arith.constant 1 : index
    %c0_29 = arith.constant 0 : index
    %c0_30 = arith.constant 0 : index
    %65 = vector.load %arg4[%c1, %c0_29, %c0_30] : memref<4x1x128xf32, #tpu.memory_space<vmem>>, vector<1x1x128xf32>
    %66 = vector.shape_cast %65 : vector<1x1x128xf32> to vector<1x128xf32>
    %67 = vector.broadcast %66 : vector<1x128xf32> to vector<16x128xf32>
    %68 = arith.mulf %35, %67 : vector<16x128xf32>
    %69 = arith.truncf %68 : vector<16x128xf32> to vector<16x128xbf16>
    %cst_31 = arith.constant dense<0.000000e+00> : vector<16x16xf32>
    %70 = tpu.matmul %69, %38, %cst_31 {dimension_numbers = #tpu.dot_dimension_numbers<[1], [1], [0], [0], [0, 0, 1, 0], [], []>} : vector<16x128xbf16>, vector<16x128xbf16>, vector<16x16xf32> -> vector<16x16xf32>
    %cst_32 = arith.constant 0.353553385 : f32
    %71 = vector.broadcast %cst_32 : f32 to vector<16x16xf32>
    %72 = arith.mulf %70, %71 : vector<16x16xf32>
    %73 = arith.addf %72, %26 : vector<16x16xf32>
    %cst_33 = arith.constant dense<0xFF800000> : vector<16xf32>
    %74 = vector.multi_reduction <maximumf>, %73, %cst_33 [1] : vector<16x16xf32> to vector<16xf32>
    %75 = vector.shape_cast %74 : vector<16xf32> to vector<16x1xf32>
    %76 = vector.broadcast %75 : vector<16x1xf32> to vector<16x16xf32>
    %77 = arith.subf %73, %76 : vector<16x16xf32>
    %78 = math.exp %77 : vector<16x16xf32>
    %cst_34 = arith.constant dense<0.000000e+00> : vector<16xf32>
    %79 = vector.multi_reduction <add>, %78, %cst_34 [1] : vector<16x16xf32> to vector<16xf32>
    %80 = vector.shape_cast %79 : vector<16xf32> to vector<16x1xf32>
    %81 = tpu.reciprocal %80 {approx = true} : vector<16x1xf32> -> vector<16x1xf32>
    %82 = vector.broadcast %81 : vector<16x1xf32> to vector<16x16xf32>
    %83 = arith.mulf %78, %82 : vector<16x16xf32>
    %84 = vector.broadcast %66 : vector<1x128xf32> to vector<16x128xf32>
    %85 = arith.mulf %37, %84 : vector<16x128xf32>
    %86 = arith.truncf %85 : vector<16x128xf32> to vector<16x128xbf16>
    %87 = arith.truncf %83 : vector<16x16xf32> to vector<16x16xbf16>
    %cst_35 = arith.constant dense<0.000000e+00> : vector<16x128xf32>
    %88 = tpu.matmul %87, %86, %cst_35 {dimension_numbers = #tpu.dot_dimension_numbers<[1], [0], [0], [1], [0, 0, 1, 1], [], []>} : vector<16x16xbf16>, vector<16x128xbf16>, vector<16x128xf32> -> vector<16x128xf32>
    %89 = arith.addf %64, %88 : vector<16x128xf32>
    %c2 = arith.constant 2 : index
    %c0_36 = arith.constant 0 : index
    %c0_37 = arith.constant 0 : index
    %90 = vector.load %arg4[%c2, %c0_36, %c0_37] : memref<4x1x128xf32, #tpu.memory_space<vmem>>, vector<1x1x128xf32>
    %91 = vector.shape_cast %90 : vector<1x1x128xf32> to vector<1x128xf32>
    %92 = vector.broadcast %91 : vector<1x128xf32> to vector<16x128xf32>
    %93 = arith.mulf %35, %92 : vector<16x128xf32>
    %94 = arith.truncf %93 : vector<16x128xf32> to vector<16x128xbf16>
    %cst_38 = arith.constant dense<0.000000e+00> : vector<16x16xf32>
    %95 = tpu.matmul %94, %38, %cst_38 {dimension_numbers = #tpu.dot_dimension_numbers<[1], [1], [0], [0], [0, 0, 1, 0], [], []>} : vector<16x128xbf16>, vector<16x128xbf16>, vector<16x16xf32> -> vector<16x16xf32>
    %cst_39 = arith.constant 0.353553385 : f32
    %96 = vector.broadcast %cst_39 : f32 to vector<16x16xf32>
    %97 = arith.mulf %95, %96 : vector<16x16xf32>
    %98 = arith.addf %97, %26 : vector<16x16xf32>
    %cst_40 = arith.constant dense<0xFF800000> : vector<16xf32>
    %99 = vector.multi_reduction <maximumf>, %98, %cst_40 [1] : vector<16x16xf32> to vector<16xf32>
    %100 = vector.shape_cast %99 : vector<16xf32> to vector<16x1xf32>
    %101 = vector.broadcast %100 : vector<16x1xf32> to vector<16x16xf32>
    %102 = arith.subf %98, %101 : vector<16x16xf32>
    %103 = math.exp %102 : vector<16x16xf32>
    %cst_41 = arith.constant dense<0.000000e+00> : vector<16xf32>
    %104 = vector.multi_reduction <add>, %103, %cst_41 [1] : vector<16x16xf32> to vector<16xf32>
    %105 = vector.shape_cast %104 : vector<16xf32> to vector<16x1xf32>
    %106 = tpu.reciprocal %105 {approx = true} : vector<16x1xf32> -> vector<16x1xf32>
    %107 = vector.broadcast %106 : vector<16x1xf32> to vector<16x16xf32>
    %108 = arith.mulf %103, %107 : vector<16x16xf32>
    %109 = vector.broadcast %91 : vector<1x128xf32> to vector<16x128xf32>
    %110 = arith.mulf %37, %109 : vector<16x128xf32>
    %111 = arith.truncf %110 : vector<16x128xf32> to vector<16x128xbf16>
    %112 = arith.truncf %108 : vector<16x16xf32> to vector<16x16xbf16>
    %cst_42 = arith.constant dense<0.000000e+00> : vector<16x128xf32>
    %113 = tpu.matmul %112, %111, %cst_42 {dimension_numbers = #tpu.dot_dimension_numbers<[1], [0], [0], [1], [0, 0, 1, 1], [], []>} : vector<16x16xbf16>, vector<16x128xbf16>, vector<16x128xf32> -> vector<16x128xf32>
    %114 = arith.addf %89, %113 : vector<16x128xf32>
    %c3 = arith.constant 3 : index
    %c0_43 = arith.constant 0 : index
    %c0_44 = arith.constant 0 : index
    %115 = vector.load %arg4[%c3, %c0_43, %c0_44] : memref<4x1x128xf32, #tpu.memory_space<vmem>>, vector<1x1x128xf32>
    %116 = vector.shape_cast %115 : vector<1x1x128xf32> to vector<1x128xf32>
    %117 = vector.broadcast %116 : vector<1x128xf32> to vector<16x128xf32>
    %118 = arith.mulf %35, %117 : vector<16x128xf32>
    %119 = arith.truncf %118 : vector<16x128xf32> to vector<16x128xbf16>
    %cst_45 = arith.constant dense<0.000000e+00> : vector<16x16xf32>
    %120 = tpu.matmul %119, %38, %cst_45 {dimension_numbers = #tpu.dot_dimension_numbers<[1], [1], [0], [0], [0, 0, 1, 0], [], []>} : vector<16x128xbf16>, vector<16x128xbf16>, vector<16x16xf32> -> vector<16x16xf32>
    %cst_46 = arith.constant 0.353553385 : f32
    %121 = vector.broadcast %cst_46 : f32 to vector<16x16xf32>
    %122 = arith.mulf %120, %121 : vector<16x16xf32>
    %123 = arith.addf %122, %26 : vector<16x16xf32>
    %cst_47 = arith.constant dense<0xFF800000> : vector<16xf32>
    %124 = vector.multi_reduction <maximumf>, %123, %cst_47 [1] : vector<16x16xf32> to vector<16xf32>
    %125 = vector.shape_cast %124 : vector<16xf32> to vector<16x1xf32>
    %126 = vector.broadcast %125 : vector<16x1xf32> to vector<16x16xf32>
    %127 = arith.subf %123, %126 : vector<16x16xf32>
    %128 = math.exp %127 : vector<16x16xf32>
    %cst_48 = arith.constant dense<0.000000e+00> : vector<16xf32>
    %129 = vector.multi_reduction <add>, %128, %cst_48 [1] : vector<16x16xf32> to vector<16xf32>
    %130 = vector.shape_cast %129 : vector<16xf32> to vector<16x1xf32>
    %131 = tpu.reciprocal %130 {approx = true} : vector<16x1xf32> -> vector<16x1xf32>
    %132 = vector.broadcast %131 : vector<16x1xf32> to vector<16x16xf32>
    %133 = arith.mulf %128, %132 : vector<16x16xf32>
    %134 = vector.broadcast %116 : vector<1x128xf32> to vector<16x128xf32>
    %135 = arith.mulf %37, %134 : vector<16x128xf32>
    %136 = arith.truncf %135 : vector<16x128xf32> to vector<16x128xbf16>
    %137 = arith.truncf %133 : vector<16x16xf32> to vector<16x16xbf16>
    %cst_49 = arith.constant dense<0.000000e+00> : vector<16x128xf32>
    %138 = tpu.matmul %137, %136, %cst_49 {dimension_numbers = #tpu.dot_dimension_numbers<[1], [0], [0], [1], [0, 0, 1, 1], [], []>} : vector<16x16xbf16>, vector<16x128xbf16>, vector<16x128xf32> -> vector<16x128xf32>
    %139 = arith.addf %114, %138 : vector<16x128xf32>
    %c0_50 = arith.constant 0 : index
    %c0_51 = arith.constant 0 : index
    %c0_52 = arith.constant 0 : index
    %140 = vector.load %arg10[%c0_50, %c0_51, %c0_52] : memref<2x128x128xbf16, #tpu.memory_space<vmem>>, vector<1x128x128xbf16>
    %141 = vector.shape_cast %140 : vector<1x128x128xbf16> to vector<128x128xbf16>
    %142 = arith.truncf %139 : vector<16x128xf32> to vector<16x128xbf16>
    %cst_53 = arith.constant dense<0.000000e+00> : vector<16x128xf32>
    %143 = tpu.matmul %142, %141, %cst_53 {dimension_numbers = #tpu.dot_dimension_numbers<[1], [0], [0], [1], [0, 0, 1, 1], [], []>} : vector<16x128xbf16>, vector<128x128xbf16>, vector<16x128xf32> -> vector<16x128xf32>
    %c0_54 = arith.constant 0 : index
    %c0_55 = arith.constant 0 : index
    %c0_56 = arith.constant 0 : index
    %144 = vector.load %arg11[%c0_54, %c0_55, %c0_56] : memref<2x1x128xf32, #tpu.memory_space<vmem>>, vector<1x1x128xf32>
    %145 = vector.shape_cast %144 : vector<1x1x128xf32> to vector<1x128xf32>
    %146 = vector.broadcast %145 : vector<1x128xf32> to vector<16x128xf32>
    %147 = arith.addf %143, %146 : vector<16x128xf32>
    %148 = arith.addf %25, %147 : vector<16x128xf32>
    %c0_57 = arith.constant 0 : index
    %c0_58 = arith.constant 0 : index
    %c0_59 = arith.constant 0 : index
    %149 = vector.load %arg12[%c0_57, %c0_58, %c0_59] : memref<2x1x128xf32, #tpu.memory_space<vmem>>, vector<1x1x128xf32>
    %150 = vector.shape_cast %149 : vector<1x1x128xf32> to vector<1x128xf32>
    %c0_60 = arith.constant 0 : index
    %c0_61 = arith.constant 0 : index
    %c0_62 = arith.constant 0 : index
    %151 = vector.load %arg13[%c0_60, %c0_61, %c0_62] : memref<2x1x128xf32, #tpu.memory_space<vmem>>, vector<1x1x128xf32>
    %152 = vector.shape_cast %151 : vector<1x1x128xf32> to vector<1x128xf32>
    %cst_63 = arith.constant dense<0.000000e+00> : vector<16xf32>
    %153 = vector.multi_reduction <add>, %148, %cst_63 [1] : vector<16x128xf32> to vector<16xf32>
    %154 = vector.shape_cast %153 : vector<16xf32> to vector<16x1xf32>
    %cst_64 = arith.constant 3.125000e-02 : f32
    %155 = vector.broadcast %cst_64 : f32 to vector<16x1xf32>
    %156 = arith.mulf %154, %155 : vector<16x1xf32>
    %157 = vector.broadcast %156 : vector<16x1xf32> to vector<16x128xf32>
    %158 = arith.subf %148, %157 : vector<16x128xf32>
    %159 = vector.broadcast %0 : vector<1x128xf32> to vector<16x128xf32>
    %160 = arith.mulf %158, %159 : vector<16x128xf32>
    %161 = arith.mulf %160, %160 : vector<16x128xf32>
    %cst_65 = arith.constant dense<0.000000e+00> : vector<16xf32>
    %162 = vector.multi_reduction <add>, %161, %cst_65 [1] : vector<16x128xf32> to vector<16xf32>
    %163 = vector.shape_cast %162 : vector<16xf32> to vector<16x1xf32>
    %cst_66 = arith.constant 3.125000e-02 : f32
    %164 = vector.broadcast %cst_66 : f32 to vector<16x1xf32>
    %165 = arith.mulf %163, %164 : vector<16x1xf32>
    %cst_67 = arith.constant 9.99999996E-13 : f32
    %166 = vector.broadcast %cst_67 : f32 to vector<16x1xf32>
    %167 = arith.addf %165, %166 : vector<16x1xf32>
    %168 = math.rsqrt %167 : vector<16x1xf32>
    %169 = vector.broadcast %168 : vector<16x1xf32> to vector<16x128xf32>
    %170 = arith.mulf %160, %169 : vector<16x128xf32>
    %171 = vector.broadcast %150 : vector<1x128xf32> to vector<16x128xf32>
    %172 = arith.mulf %170, %171 : vector<16x128xf32>
    %173 = vector.broadcast %152 : vector<1x128xf32> to vector<16x128xf32>
    %174 = arith.addf %172, %173 : vector<16x128xf32>
    %c0_68 = arith.constant 0 : index
    %c0_69 = arith.constant 0 : index
    %c0_70 = arith.constant 0 : index
    %175 = vector.load %arg14[%c0_68, %c0_69, %c0_70] : memref<2x128x128xbf16, #tpu.memory_space<vmem>>, vector<1x128x128xbf16>
    %176 = vector.shape_cast %175 : vector<1x128x128xbf16> to vector<128x128xbf16>
    %177 = arith.truncf %174 : vector<16x128xf32> to vector<16x128xbf16>
    %cst_71 = arith.constant dense<0.000000e+00> : vector<16x128xf32>
    %178 = tpu.matmul %177, %176, %cst_71 {dimension_numbers = #tpu.dot_dimension_numbers<[1], [0], [0], [1], [0, 0, 1, 1], [], []>} : vector<16x128xbf16>, vector<128x128xbf16>, vector<16x128xf32> -> vector<16x128xf32>
    %c0_72 = arith.constant 0 : index
    %c0_73 = arith.constant 0 : index
    %c0_74 = arith.constant 0 : index
    %179 = vector.load %arg15[%c0_72, %c0_73, %c0_74] : memref<2x1x128xf32, #tpu.memory_space<vmem>>, vector<1x1x128xf32>
    %180 = vector.shape_cast %179 : vector<1x1x128xf32> to vector<1x128xf32>
    %181 = vector.broadcast %180 : vector<1x128xf32> to vector<16x128xf32>
    %182 = arith.addf %178, %181 : vector<16x128xf32>
    %cst_75 = arith.constant 5.000000e-01 : f32
    %183 = vector.broadcast %cst_75 : f32 to vector<16x128xf32>
    %184 = arith.mulf %183, %182 : vector<16x128xf32>
    %cst_76 = arith.constant 4.471500e-02 : f32
    %185 = vector.broadcast %cst_76 : f32 to vector<16x128xf32>
    %186 = arith.mulf %185, %182 : vector<16x128xf32>
    %187 = arith.mulf %186, %182 : vector<16x128xf32>
    %188 = arith.mulf %187, %182 : vector<16x128xf32>
    %189 = arith.addf %182, %188 : vector<16x128xf32>
    %cst_77 = arith.constant 0.797884583 : f32
    %190 = vector.broadcast %cst_77 : f32 to vector<16x128xf32>
    %191 = arith.mulf %190, %189 : vector<16x128xf32>
    %192 = math.tanh %191 : vector<16x128xf32>
    %cst_78 = arith.constant 1.000000e+00 : f32
    %193 = vector.broadcast %cst_78 : f32 to vector<16x128xf32>
    %194 = arith.addf %193, %192 : vector<16x128xf32>
    %195 = arith.mulf %184, %194 : vector<16x128xf32>
    %c0_79 = arith.constant 0 : index
    %c0_80 = arith.constant 0 : index
    %c0_81 = arith.constant 0 : index
    %196 = vector.load %arg16[%c0_79, %c0_80, %c0_81] : memref<2x128x128xbf16, #tpu.memory_space<vmem>>, vector<1x128x128xbf16>
    %197 = vector.shape_cast %196 : vector<1x128x128xbf16> to vector<128x128xbf16>
    %198 = arith.truncf %195 : vector<16x128xf32> to vector<16x128xbf16>
    %cst_82 = arith.constant dense<0.000000e+00> : vector<16x128xf32>
    %199 = tpu.matmul %198, %197, %cst_82 {dimension_numbers = #tpu.dot_dimension_numbers<[1], [0], [0], [1], [0, 0, 1, 1], [], []>} : vector<16x128xbf16>, vector<128x128xbf16>, vector<16x128xf32> -> vector<16x128xf32>
    %c0_83 = arith.constant 0 : index
    %c0_84 = arith.constant 0 : index
    %c0_85 = arith.constant 0 : index
    %200 = vector.load %arg17[%c0_83, %c0_84, %c0_85] : memref<2x1x128xf32, #tpu.memory_space<vmem>>, vector<1x1x128xf32>
    %201 = vector.shape_cast %200 : vector<1x1x128xf32> to vector<1x128xf32>
    %202 = vector.broadcast %201 : vector<1x128xf32> to vector<16x128xf32>
    %203 = arith.addf %199, %202 : vector<16x128xf32>
    %204 = arith.addf %174, %203 : vector<16x128xf32>
    %c0_86 = arith.constant 0 : index
    %c0_87 = arith.constant 0 : index
    %c0_88 = arith.constant 0 : index
    %205 = vector.load %arg18[%c0_86, %c0_87, %c0_88] : memref<2x1x128xf32, #tpu.memory_space<vmem>>, vector<1x1x128xf32>
    %206 = vector.shape_cast %205 : vector<1x1x128xf32> to vector<1x128xf32>
    %c0_89 = arith.constant 0 : index
    %c0_90 = arith.constant 0 : index
    %c0_91 = arith.constant 0 : index
    %207 = vector.load %arg19[%c0_89, %c0_90, %c0_91] : memref<2x1x128xf32, #tpu.memory_space<vmem>>, vector<1x1x128xf32>
    %208 = vector.shape_cast %207 : vector<1x1x128xf32> to vector<1x128xf32>
    %cst_92 = arith.constant dense<0.000000e+00> : vector<16xf32>
    %209 = vector.multi_reduction <add>, %204, %cst_92 [1] : vector<16x128xf32> to vector<16xf32>
    %210 = vector.shape_cast %209 : vector<16xf32> to vector<16x1xf32>
    %cst_93 = arith.constant 3.125000e-02 : f32
    %211 = vector.broadcast %cst_93 : f32 to vector<16x1xf32>
    %212 = arith.mulf %210, %211 : vector<16x1xf32>
    %213 = vector.broadcast %212 : vector<16x1xf32> to vector<16x128xf32>
    %214 = arith.subf %204, %213 : vector<16x128xf32>
    %215 = vector.broadcast %0 : vector<1x128xf32> to vector<16x128xf32>
    %216 = arith.mulf %214, %215 : vector<16x128xf32>
    %217 = arith.mulf %216, %216 : vector<16x128xf32>
    %cst_94 = arith.constant dense<0.000000e+00> : vector<16xf32>
    %218 = vector.multi_reduction <add>, %217, %cst_94 [1] : vector<16x128xf32> to vector<16xf32>
    %219 = vector.shape_cast %218 : vector<16xf32> to vector<16x1xf32>
    %cst_95 = arith.constant 3.125000e-02 : f32
    %220 = vector.broadcast %cst_95 : f32 to vector<16x1xf32>
    %221 = arith.mulf %219, %220 : vector<16x1xf32>
    %cst_96 = arith.constant 9.99999996E-13 : f32
    %222 = vector.broadcast %cst_96 : f32 to vector<16x1xf32>
    %223 = arith.addf %221, %222 : vector<16x1xf32>
    %224 = math.rsqrt %223 : vector<16x1xf32>
    %225 = vector.broadcast %224 : vector<16x1xf32> to vector<16x128xf32>
    %226 = arith.mulf %216, %225 : vector<16x128xf32>
    %227 = vector.broadcast %206 : vector<1x128xf32> to vector<16x128xf32>
    %228 = arith.mulf %226, %227 : vector<16x128xf32>
    %229 = vector.broadcast %208 : vector<1x128xf32> to vector<16x128xf32>
    %230 = arith.addf %228, %229 : vector<16x128xf32>
    %c1_97 = arith.constant 1 : index
    %c0_98 = arith.constant 0 : index
    %c0_99 = arith.constant 0 : index
    %231 = vector.load %arg8[%c1_97, %c0_98, %c0_99] : memref<2x128x384xbf16, #tpu.memory_space<vmem>>, vector<1x128x384xbf16>
    %232 = vector.shape_cast %231 : vector<1x128x384xbf16> to vector<128x384xbf16>
    %233 = arith.truncf %230 : vector<16x128xf32> to vector<16x128xbf16>
    %cst_100 = arith.constant dense<0.000000e+00> : vector<16x384xf32>
    %234 = tpu.matmul %233, %232, %cst_100 {dimension_numbers = #tpu.dot_dimension_numbers<[1], [0], [0], [1], [0, 0, 1, 1], [], []>} : vector<16x128xbf16>, vector<128x384xbf16>, vector<16x384xf32> -> vector<16x384xf32>
    %c1_101 = arith.constant 1 : index
    %c0_102 = arith.constant 0 : index
    %c0_103 = arith.constant 0 : index
    %235 = vector.load %arg9[%c1_101, %c0_102, %c0_103] : memref<2x1x384xf32, #tpu.memory_space<vmem>>, vector<1x1x384xf32>
    %236 = vector.shape_cast %235 : vector<1x1x384xf32> to vector<1x384xf32>
    %237 = vector.broadcast %236 : vector<1x384xf32> to vector<16x384xf32>
    %238 = arith.addf %234, %237 : vector<16x384xf32>
    %239 = vector.extract_strided_slice %238 {offsets = [0, 0], sizes = [16, 128], strides = [1, 1]} : vector<16x384xf32> to vector<16x128xf32>
    %240 = vector.extract_strided_slice %238 {offsets = [0, 128], sizes = [16, 128], strides = [1, 1]} : vector<16x384xf32> to vector<16x128xf32>
    %241 = vector.extract_strided_slice %238 {offsets = [0, 256], sizes = [16, 128], strides = [1, 1]} : vector<16x384xf32> to vector<16x128xf32>
    %242 = arith.truncf %240 : vector<16x128xf32> to vector<16x128xbf16>
    %cst_104 = arith.constant 0.000000e+00 : f32
    %243 = vector.broadcast %cst_104 : f32 to vector<16x128xf32>
    %c0_105 = arith.constant 0 : index
    %c0_106 = arith.constant 0 : index
    %c0_107 = arith.constant 0 : index
    %244 = vector.load %arg4[%c0_105, %c0_106, %c0_107] : memref<4x1x128xf32, #tpu.memory_space<vmem>>, vector<1x1x128xf32>
    %245 = vector.shape_cast %244 : vector<1x1x128xf32> to vector<1x128xf32>
    %246 = vector.broadcast %245 : vector<1x128xf32> to vector<16x128xf32>
    %247 = arith.mulf %239, %246 : vector<16x128xf32>
    %248 = arith.truncf %247 : vector<16x128xf32> to vector<16x128xbf16>
    %cst_108 = arith.constant dense<0.000000e+00> : vector<16x16xf32>
    %249 = tpu.matmul %248, %242, %cst_108 {dimension_numbers = #tpu.dot_dimension_numbers<[1], [1], [0], [0], [0, 0, 1, 0], [], []>} : vector<16x128xbf16>, vector<16x128xbf16>, vector<16x16xf32> -> vector<16x16xf32>
    %cst_109 = arith.constant 0.353553385 : f32
    %250 = vector.broadcast %cst_109 : f32 to vector<16x16xf32>
    %251 = arith.mulf %249, %250 : vector<16x16xf32>
    %252 = arith.addf %251, %26 : vector<16x16xf32>
    %cst_110 = arith.constant dense<0xFF800000> : vector<16xf32>
    %253 = vector.multi_reduction <maximumf>, %252, %cst_110 [1] : vector<16x16xf32> to vector<16xf32>
    %254 = vector.shape_cast %253 : vector<16xf32> to vector<16x1xf32>
    %255 = vector.broadcast %254 : vector<16x1xf32> to vector<16x16xf32>
    %256 = arith.subf %252, %255 : vector<16x16xf32>
    %257 = math.exp %256 : vector<16x16xf32>
    %cst_111 = arith.constant dense<0.000000e+00> : vector<16xf32>
    %258 = vector.multi_reduction <add>, %257, %cst_111 [1] : vector<16x16xf32> to vector<16xf32>
    %259 = vector.shape_cast %258 : vector<16xf32> to vector<16x1xf32>
    %260 = tpu.reciprocal %259 {approx = true} : vector<16x1xf32> -> vector<16x1xf32>
    %261 = vector.broadcast %260 : vector<16x1xf32> to vector<16x16xf32>
    %262 = arith.mulf %257, %261 : vector<16x16xf32>
    %263 = vector.broadcast %245 : vector<1x128xf32> to vector<16x128xf32>
    %264 = arith.mulf %241, %263 : vector<16x128xf32>
    %265 = arith.truncf %264 : vector<16x128xf32> to vector<16x128xbf16>
    %266 = arith.truncf %262 : vector<16x16xf32> to vector<16x16xbf16>
    %cst_112 = arith.constant dense<0.000000e+00> : vector<16x128xf32>
    %267 = tpu.matmul %266, %265, %cst_112 {dimension_numbers = #tpu.dot_dimension_numbers<[1], [0], [0], [1], [0, 0, 1, 1], [], []>} : vector<16x16xbf16>, vector<16x128xbf16>, vector<16x128xf32> -> vector<16x128xf32>
    %268 = arith.addf %243, %267 : vector<16x128xf32>
    %c1_113 = arith.constant 1 : index
    %c0_114 = arith.constant 0 : index
    %c0_115 = arith.constant 0 : index
    %269 = vector.load %arg4[%c1_113, %c0_114, %c0_115] : memref<4x1x128xf32, #tpu.memory_space<vmem>>, vector<1x1x128xf32>
    %270 = vector.shape_cast %269 : vector<1x1x128xf32> to vector<1x128xf32>
    %271 = vector.broadcast %270 : vector<1x128xf32> to vector<16x128xf32>
    %272 = arith.mulf %239, %271 : vector<16x128xf32>
    %273 = arith.truncf %272 : vector<16x128xf32> to vector<16x128xbf16>
    %cst_116 = arith.constant dense<0.000000e+00> : vector<16x16xf32>
    %274 = tpu.matmul %273, %242, %cst_116 {dimension_numbers = #tpu.dot_dimension_numbers<[1], [1], [0], [0], [0, 0, 1, 0], [], []>} : vector<16x128xbf16>, vector<16x128xbf16>, vector<16x16xf32> -> vector<16x16xf32>
    %cst_117 = arith.constant 0.353553385 : f32
    %275 = vector.broadcast %cst_117 : f32 to vector<16x16xf32>
    %276 = arith.mulf %274, %275 : vector<16x16xf32>
    %277 = arith.addf %276, %26 : vector<16x16xf32>
    %cst_118 = arith.constant dense<0xFF800000> : vector<16xf32>
    %278 = vector.multi_reduction <maximumf>, %277, %cst_118 [1] : vector<16x16xf32> to vector<16xf32>
    %279 = vector.shape_cast %278 : vector<16xf32> to vector<16x1xf32>
    %280 = vector.broadcast %279 : vector<16x1xf32> to vector<16x16xf32>
    %281 = arith.subf %277, %280 : vector<16x16xf32>
    %282 = math.exp %281 : vector<16x16xf32>
    %cst_119 = arith.constant dense<0.000000e+00> : vector<16xf32>
    %283 = vector.multi_reduction <add>, %282, %cst_119 [1] : vector<16x16xf32> to vector<16xf32>
    %284 = vector.shape_cast %283 : vector<16xf32> to vector<16x1xf32>
    %285 = tpu.reciprocal %284 {approx = true} : vector<16x1xf32> -> vector<16x1xf32>
    %286 = vector.broadcast %285 : vector<16x1xf32> to vector<16x16xf32>
    %287 = arith.mulf %282, %286 : vector<16x16xf32>
    %288 = vector.broadcast %270 : vector<1x128xf32> to vector<16x128xf32>
    %289 = arith.mulf %241, %288 : vector<16x128xf32>
    %290 = arith.truncf %289 : vector<16x128xf32> to vector<16x128xbf16>
    %291 = arith.truncf %287 : vector<16x16xf32> to vector<16x16xbf16>
    %cst_120 = arith.constant dense<0.000000e+00> : vector<16x128xf32>
    %292 = tpu.matmul %291, %290, %cst_120 {dimension_numbers = #tpu.dot_dimension_numbers<[1], [0], [0], [1], [0, 0, 1, 1], [], []>} : vector<16x16xbf16>, vector<16x128xbf16>, vector<16x128xf32> -> vector<16x128xf32>
    %293 = arith.addf %268, %292 : vector<16x128xf32>
    %c2_121 = arith.constant 2 : index
    %c0_122 = arith.constant 0 : index
    %c0_123 = arith.constant 0 : index
    %294 = vector.load %arg4[%c2_121, %c0_122, %c0_123] : memref<4x1x128xf32, #tpu.memory_space<vmem>>, vector<1x1x128xf32>
    %295 = vector.shape_cast %294 : vector<1x1x128xf32> to vector<1x128xf32>
    %296 = vector.broadcast %295 : vector<1x128xf32> to vector<16x128xf32>
    %297 = arith.mulf %239, %296 : vector<16x128xf32>
    %298 = arith.truncf %297 : vector<16x128xf32> to vector<16x128xbf16>
    %cst_124 = arith.constant dense<0.000000e+00> : vector<16x16xf32>
    %299 = tpu.matmul %298, %242, %cst_124 {dimension_numbers = #tpu.dot_dimension_numbers<[1], [1], [0], [0], [0, 0, 1, 0], [], []>} : vector<16x128xbf16>, vector<16x128xbf16>, vector<16x16xf32> -> vector<16x16xf32>
    %cst_125 = arith.constant 0.353553385 : f32
    %300 = vector.broadcast %cst_125 : f32 to vector<16x16xf32>
    %301 = arith.mulf %299, %300 : vector<16x16xf32>
    %302 = arith.addf %301, %26 : vector<16x16xf32>
    %cst_126 = arith.constant dense<0xFF800000> : vector<16xf32>
    %303 = vector.multi_reduction <maximumf>, %302, %cst_126 [1] : vector<16x16xf32> to vector<16xf32>
    %304 = vector.shape_cast %303 : vector<16xf32> to vector<16x1xf32>
    %305 = vector.broadcast %304 : vector<16x1xf32> to vector<16x16xf32>
    %306 = arith.subf %302, %305 : vector<16x16xf32>
    %307 = math.exp %306 : vector<16x16xf32>
    %cst_127 = arith.constant dense<0.000000e+00> : vector<16xf32>
    %308 = vector.multi_reduction <add>, %307, %cst_127 [1] : vector<16x16xf32> to vector<16xf32>
    %309 = vector.shape_cast %308 : vector<16xf32> to vector<16x1xf32>
    %310 = tpu.reciprocal %309 {approx = true} : vector<16x1xf32> -> vector<16x1xf32>
    %311 = vector.broadcast %310 : vector<16x1xf32> to vector<16x16xf32>
    %312 = arith.mulf %307, %311 : vector<16x16xf32>
    %313 = vector.broadcast %295 : vector<1x128xf32> to vector<16x128xf32>
    %314 = arith.mulf %241, %313 : vector<16x128xf32>
    %315 = arith.truncf %314 : vector<16x128xf32> to vector<16x128xbf16>
    %316 = arith.truncf %312 : vector<16x16xf32> to vector<16x16xbf16>
    %cst_128 = arith.constant dense<0.000000e+00> : vector<16x128xf32>
    %317 = tpu.matmul %316, %315, %cst_128 {dimension_numbers = #tpu.dot_dimension_numbers<[1], [0], [0], [1], [0, 0, 1, 1], [], []>} : vector<16x16xbf16>, vector<16x128xbf16>, vector<16x128xf32> -> vector<16x128xf32>
    %318 = arith.addf %293, %317 : vector<16x128xf32>
    %c3_129 = arith.constant 3 : index
    %c0_130 = arith.constant 0 : index
    %c0_131 = arith.constant 0 : index
    %319 = vector.load %arg4[%c3_129, %c0_130, %c0_131] : memref<4x1x128xf32, #tpu.memory_space<vmem>>, vector<1x1x128xf32>
    %320 = vector.shape_cast %319 : vector<1x1x128xf32> to vector<1x128xf32>
    %321 = vector.broadcast %320 : vector<1x128xf32> to vector<16x128xf32>
    %322 = arith.mulf %239, %321 : vector<16x128xf32>
    %323 = arith.truncf %322 : vector<16x128xf32> to vector<16x128xbf16>
    %cst_132 = arith.constant dense<0.000000e+00> : vector<16x16xf32>
    %324 = tpu.matmul %323, %242, %cst_132 {dimension_numbers = #tpu.dot_dimension_numbers<[1], [1], [0], [0], [0, 0, 1, 0], [], []>} : vector<16x128xbf16>, vector<16x128xbf16>, vector<16x16xf32> -> vector<16x16xf32>
    %cst_133 = arith.constant 0.353553385 : f32
    %325 = vector.broadcast %cst_133 : f32 to vector<16x16xf32>
    %326 = arith.mulf %324, %325 : vector<16x16xf32>
    %327 = arith.addf %326, %26 : vector<16x16xf32>
    %cst_134 = arith.constant dense<0xFF800000> : vector<16xf32>
    %328 = vector.multi_reduction <maximumf>, %327, %cst_134 [1] : vector<16x16xf32> to vector<16xf32>
    %329 = vector.shape_cast %328 : vector<16xf32> to vector<16x1xf32>
    %330 = vector.broadcast %329 : vector<16x1xf32> to vector<16x16xf32>
    %331 = arith.subf %327, %330 : vector<16x16xf32>
    %332 = math.exp %331 : vector<16x16xf32>
    %cst_135 = arith.constant dense<0.000000e+00> : vector<16xf32>
    %333 = vector.multi_reduction <add>, %332, %cst_135 [1] : vector<16x16xf32> to vector<16xf32>
    %334 = vector.shape_cast %333 : vector<16xf32> to vector<16x1xf32>
    %335 = tpu.reciprocal %334 {approx = true} : vector<16x1xf32> -> vector<16x1xf32>
    %336 = vector.broadcast %335 : vector<16x1xf32> to vector<16x16xf32>
    %337 = arith.mulf %332, %336 : vector<16x16xf32>
    %338 = vector.broadcast %320 : vector<1x128xf32> to vector<16x128xf32>
    %339 = arith.mulf %241, %338 : vector<16x128xf32>
    %340 = arith.truncf %339 : vector<16x128xf32> to vector<16x128xbf16>
    %341 = arith.truncf %337 : vector<16x16xf32> to vector<16x16xbf16>
    %cst_136 = arith.constant dense<0.000000e+00> : vector<16x128xf32>
    %342 = tpu.matmul %341, %340, %cst_136 {dimension_numbers = #tpu.dot_dimension_numbers<[1], [0], [0], [1], [0, 0, 1, 1], [], []>} : vector<16x16xbf16>, vector<16x128xbf16>, vector<16x128xf32> -> vector<16x128xf32>
    %343 = arith.addf %318, %342 : vector<16x128xf32>
    %c1_137 = arith.constant 1 : index
    %c0_138 = arith.constant 0 : index
    %c0_139 = arith.constant 0 : index
    %344 = vector.load %arg10[%c1_137, %c0_138, %c0_139] : memref<2x128x128xbf16, #tpu.memory_space<vmem>>, vector<1x128x128xbf16>
    %345 = vector.shape_cast %344 : vector<1x128x128xbf16> to vector<128x128xbf16>
    %346 = arith.truncf %343 : vector<16x128xf32> to vector<16x128xbf16>
    %cst_140 = arith.constant dense<0.000000e+00> : vector<16x128xf32>
    %347 = tpu.matmul %346, %345, %cst_140 {dimension_numbers = #tpu.dot_dimension_numbers<[1], [0], [0], [1], [0, 0, 1, 1], [], []>} : vector<16x128xbf16>, vector<128x128xbf16>, vector<16x128xf32> -> vector<16x128xf32>
    %c1_141 = arith.constant 1 : index
    %c0_142 = arith.constant 0 : index
    %c0_143 = arith.constant 0 : index
    %348 = vector.load %arg11[%c1_141, %c0_142, %c0_143] : memref<2x1x128xf32, #tpu.memory_space<vmem>>, vector<1x1x128xf32>
    %349 = vector.shape_cast %348 : vector<1x1x128xf32> to vector<1x128xf32>
    %350 = vector.broadcast %349 : vector<1x128xf32> to vector<16x128xf32>
    %351 = arith.addf %347, %350 : vector<16x128xf32>
    %352 = arith.addf %230, %351 : vector<16x128xf32>
    %c1_144 = arith.constant 1 : index
    %c0_145 = arith.constant 0 : index
    %c0_146 = arith.constant 0 : index
    %353 = vector.load %arg12[%c1_144, %c0_145, %c0_146] : memref<2x1x128xf32, #tpu.memory_space<vmem>>, vector<1x1x128xf32>
    %354 = vector.shape_cast %353 : vector<1x1x128xf32> to vector<1x128xf32>
    %c1_147 = arith.constant 1 : index
    %c0_148 = arith.constant 0 : index
    %c0_149 = arith.constant 0 : index
    %355 = vector.load %arg13[%c1_147, %c0_148, %c0_149] : memref<2x1x128xf32, #tpu.memory_space<vmem>>, vector<1x1x128xf32>
    %356 = vector.shape_cast %355 : vector<1x1x128xf32> to vector<1x128xf32>
    %cst_150 = arith.constant dense<0.000000e+00> : vector<16xf32>
    %357 = vector.multi_reduction <add>, %352, %cst_150 [1] : vector<16x128xf32> to vector<16xf32>
    %358 = vector.shape_cast %357 : vector<16xf32> to vector<16x1xf32>
    %cst_151 = arith.constant 3.125000e-02 : f32
    %359 = vector.broadcast %cst_151 : f32 to vector<16x1xf32>
    %360 = arith.mulf %358, %359 : vector<16x1xf32>
    %361 = vector.broadcast %360 : vector<16x1xf32> to vector<16x128xf32>
    %362 = arith.subf %352, %361 : vector<16x128xf32>
    %363 = vector.broadcast %0 : vector<1x128xf32> to vector<16x128xf32>
    %364 = arith.mulf %362, %363 : vector<16x128xf32>
    %365 = arith.mulf %364, %364 : vector<16x128xf32>
    %cst_152 = arith.constant dense<0.000000e+00> : vector<16xf32>
    %366 = vector.multi_reduction <add>, %365, %cst_152 [1] : vector<16x128xf32> to vector<16xf32>
    %367 = vector.shape_cast %366 : vector<16xf32> to vector<16x1xf32>
    %cst_153 = arith.constant 3.125000e-02 : f32
    %368 = vector.broadcast %cst_153 : f32 to vector<16x1xf32>
    %369 = arith.mulf %367, %368 : vector<16x1xf32>
    %cst_154 = arith.constant 9.99999996E-13 : f32
    %370 = vector.broadcast %cst_154 : f32 to vector<16x1xf32>
    %371 = arith.addf %369, %370 : vector<16x1xf32>
    %372 = math.rsqrt %371 : vector<16x1xf32>
    %373 = vector.broadcast %372 : vector<16x1xf32> to vector<16x128xf32>
    %374 = arith.mulf %364, %373 : vector<16x128xf32>
    %375 = vector.broadcast %354 : vector<1x128xf32> to vector<16x128xf32>
    %376 = arith.mulf %374, %375 : vector<16x128xf32>
    %377 = vector.broadcast %356 : vector<1x128xf32> to vector<16x128xf32>
    %378 = arith.addf %376, %377 : vector<16x128xf32>
    %c1_155 = arith.constant 1 : index
    %c0_156 = arith.constant 0 : index
    %c0_157 = arith.constant 0 : index
    %379 = vector.load %arg14[%c1_155, %c0_156, %c0_157] : memref<2x128x128xbf16, #tpu.memory_space<vmem>>, vector<1x128x128xbf16>
    %380 = vector.shape_cast %379 : vector<1x128x128xbf16> to vector<128x128xbf16>
    %381 = arith.truncf %378 : vector<16x128xf32> to vector<16x128xbf16>
    %cst_158 = arith.constant dense<0.000000e+00> : vector<16x128xf32>
    %382 = tpu.matmul %381, %380, %cst_158 {dimension_numbers = #tpu.dot_dimension_numbers<[1], [0], [0], [1], [0, 0, 1, 1], [], []>} : vector<16x128xbf16>, vector<128x128xbf16>, vector<16x128xf32> -> vector<16x128xf32>
    %c1_159 = arith.constant 1 : index
    %c0_160 = arith.constant 0 : index
    %c0_161 = arith.constant 0 : index
    %383 = vector.load %arg15[%c1_159, %c0_160, %c0_161] : memref<2x1x128xf32, #tpu.memory_space<vmem>>, vector<1x1x128xf32>
    %384 = vector.shape_cast %383 : vector<1x1x128xf32> to vector<1x128xf32>
    %385 = vector.broadcast %384 : vector<1x128xf32> to vector<16x128xf32>
    %386 = arith.addf %382, %385 : vector<16x128xf32>
    %cst_162 = arith.constant 5.000000e-01 : f32
    %387 = vector.broadcast %cst_162 : f32 to vector<16x128xf32>
    %388 = arith.mulf %387, %386 : vector<16x128xf32>
    %cst_163 = arith.constant 4.471500e-02 : f32
    %389 = vector.broadcast %cst_163 : f32 to vector<16x128xf32>
    %390 = arith.mulf %389, %386 : vector<16x128xf32>
    %391 = arith.mulf %390, %386 : vector<16x128xf32>
    %392 = arith.mulf %391, %386 : vector<16x128xf32>
    %393 = arith.addf %386, %392 : vector<16x128xf32>
    %cst_164 = arith.constant 0.797884583 : f32
    %394 = vector.broadcast %cst_164 : f32 to vector<16x128xf32>
    %395 = arith.mulf %394, %393 : vector<16x128xf32>
    %396 = math.tanh %395 : vector<16x128xf32>
    %cst_165 = arith.constant 1.000000e+00 : f32
    %397 = vector.broadcast %cst_165 : f32 to vector<16x128xf32>
    %398 = arith.addf %397, %396 : vector<16x128xf32>
    %399 = arith.mulf %388, %398 : vector<16x128xf32>
    %c1_166 = arith.constant 1 : index
    %c0_167 = arith.constant 0 : index
    %c0_168 = arith.constant 0 : index
    %400 = vector.load %arg16[%c1_166, %c0_167, %c0_168] : memref<2x128x128xbf16, #tpu.memory_space<vmem>>, vector<1x128x128xbf16>
    %401 = vector.shape_cast %400 : vector<1x128x128xbf16> to vector<128x128xbf16>
    %402 = arith.truncf %399 : vector<16x128xf32> to vector<16x128xbf16>
    %cst_169 = arith.constant dense<0.000000e+00> : vector<16x128xf32>
    %403 = tpu.matmul %402, %401, %cst_169 {dimension_numbers = #tpu.dot_dimension_numbers<[1], [0], [0], [1], [0, 0, 1, 1], [], []>} : vector<16x128xbf16>, vector<128x128xbf16>, vector<16x128xf32> -> vector<16x128xf32>
    %c1_170 = arith.constant 1 : index
    %c0_171 = arith.constant 0 : index
    %c0_172 = arith.constant 0 : index
    %404 = vector.load %arg17[%c1_170, %c0_171, %c0_172] : memref<2x1x128xf32, #tpu.memory_space<vmem>>, vector<1x1x128xf32>
    %405 = vector.shape_cast %404 : vector<1x1x128xf32> to vector<1x128xf32>
    %406 = vector.broadcast %405 : vector<1x128xf32> to vector<16x128xf32>
    %407 = arith.addf %403, %406 : vector<16x128xf32>
    %408 = arith.addf %378, %407 : vector<16x128xf32>
    %c1_173 = arith.constant 1 : index
    %c0_174 = arith.constant 0 : index
    %c0_175 = arith.constant 0 : index
    %409 = vector.load %arg18[%c1_173, %c0_174, %c0_175] : memref<2x1x128xf32, #tpu.memory_space<vmem>>, vector<1x1x128xf32>
    %410 = vector.shape_cast %409 : vector<1x1x128xf32> to vector<1x128xf32>
    %c1_176 = arith.constant 1 : index
    %c0_177 = arith.constant 0 : index
    %c0_178 = arith.constant 0 : index
    %411 = vector.load %arg19[%c1_176, %c0_177, %c0_178] : memref<2x1x128xf32, #tpu.memory_space<vmem>>, vector<1x1x128xf32>
    %412 = vector.shape_cast %411 : vector<1x1x128xf32> to vector<1x128xf32>
    %cst_179 = arith.constant dense<0.000000e+00> : vector<16xf32>
    %413 = vector.multi_reduction <add>, %408, %cst_179 [1] : vector<16x128xf32> to vector<16xf32>
    %414 = vector.shape_cast %413 : vector<16xf32> to vector<16x1xf32>
    %cst_180 = arith.constant 3.125000e-02 : f32
    %415 = vector.broadcast %cst_180 : f32 to vector<16x1xf32>
    %416 = arith.mulf %414, %415 : vector<16x1xf32>
    %417 = vector.broadcast %416 : vector<16x1xf32> to vector<16x128xf32>
    %418 = arith.subf %408, %417 : vector<16x128xf32>
    %419 = vector.broadcast %0 : vector<1x128xf32> to vector<16x128xf32>
    %420 = arith.mulf %418, %419 : vector<16x128xf32>
    %421 = arith.mulf %420, %420 : vector<16x128xf32>
    %cst_181 = arith.constant dense<0.000000e+00> : vector<16xf32>
    %422 = vector.multi_reduction <add>, %421, %cst_181 [1] : vector<16x128xf32> to vector<16xf32>
    %423 = vector.shape_cast %422 : vector<16xf32> to vector<16x1xf32>
    %cst_182 = arith.constant 3.125000e-02 : f32
    %424 = vector.broadcast %cst_182 : f32 to vector<16x1xf32>
    %425 = arith.mulf %423, %424 : vector<16x1xf32>
    %cst_183 = arith.constant 9.99999996E-13 : f32
    %426 = vector.broadcast %cst_183 : f32 to vector<16x1xf32>
    %427 = arith.addf %425, %426 : vector<16x1xf32>
    %428 = math.rsqrt %427 : vector<16x1xf32>
    %429 = vector.broadcast %428 : vector<16x1xf32> to vector<16x128xf32>
    %430 = arith.mulf %420, %429 : vector<16x128xf32>
    %431 = vector.broadcast %410 : vector<1x128xf32> to vector<16x128xf32>
    %432 = arith.mulf %430, %431 : vector<16x128xf32>
    %433 = vector.broadcast %412 : vector<1x128xf32> to vector<16x128xf32>
    %434 = arith.addf %432, %433 : vector<16x128xf32>
    %c0_184 = arith.constant 0 : index
    %c0_185 = arith.constant 0 : index
    %435 = vector.load %arg5[%c0_184, %c0_185] : memref<2x16xf32, #tpu.memory_space<vmem>>, vector<2x16xf32>
    %436 = arith.truncf %435 : vector<2x16xf32> to vector<2x16xbf16>
    %437 = arith.truncf %434 : vector<16x128xf32> to vector<16x128xbf16>
    %cst_186 = arith.constant dense<0.000000e+00> : vector<2x128xf32>
    %438 = tpu.matmul %436, %437, %cst_186 {dimension_numbers = #tpu.dot_dimension_numbers<[1], [0], [0], [1], [0, 0, 1, 1], [], []>} : vector<2x16xbf16>, vector<16x128xbf16>, vector<2x128xf32> -> vector<2x128xf32>
    %c0_187 = arith.constant 0 : index
    %c0_188 = arith.constant 0 : index
    %439 = vector.load %arg20[%c0_187, %c0_188] : memref<128x128xbf16, #tpu.memory_space<vmem>>, vector<128x128xbf16>
    %440 = arith.truncf %438 : vector<2x128xf32> to vector<2x128xbf16>
    %cst_189 = arith.constant dense<0.000000e+00> : vector<2x128xf32>
    %441 = tpu.matmul %440, %439, %cst_189 {dimension_numbers = #tpu.dot_dimension_numbers<[1], [0], [0], [1], [0, 0, 1, 1], [], []>} : vector<2x128xbf16>, vector<128x128xbf16>, vector<2x128xf32> -> vector<2x128xf32>
    %c0_190 = arith.constant 0 : index
    %c0_191 = arith.constant 0 : index
    %442 = vector.load %arg21[%c0_190, %c0_191] : memref<1x128xf32, #tpu.memory_space<vmem>>, vector<1x128xf32>
    %443 = vector.broadcast %442 : vector<1x128xf32> to vector<2x128xf32>
    %444 = arith.addf %441, %443 : vector<2x128xf32>
    %c0_192 = arith.constant 0 : index
    %c0_193 = arith.constant 0 : index
    %445 = vector.load %arg22[%c0_192, %c0_193] : memref<2x128xf32, #tpu.memory_space<vmem>>, vector<2x128xf32>
    tpu.vector_store %arg22[%c0_192, %c0_193], %444 {strides = array<i32>} : memref<2x128xf32, #tpu.memory_space<vmem>>, vector<2x128xf32>,
    return
  }
  func.func @transform_0(%arg0: i32) -> (i32, i32) {
    %c0_i32 = arith.constant 0 : i32
    %c0_i32_0 = arith.constant 0 : i32
    %c0_i32_1 = arith.constant 0 : i32
    return %c0_i32, %c0_i32_0 : i32, i32
  }
  func.func @transform_1(%arg0: i32) -> (i32, i32) {
    %c0_i32 = arith.constant 0 : i32
    %c0_i32_0 = arith.constant 0 : i32
    %c0_i32_1 = arith.constant 0 : i32
    return %c0_i32, %c0_i32_0 : i32, i32
  }
  func.func @transform_2(%arg0: i32) -> (i32, i32) {
    %c0_i32 = arith.constant 0 : i32
    %c0_i32_0 = arith.constant 0 : i32
    %c0_i32_1 = arith.constant 0 : i32
    return %c0_i32, %c0_i32_0 : i32, i32
  }
  func.func @transform_3(%arg0: i32) -> (i32, i32, i32) {
    %c0_i32 = arith.constant 0 : i32
    %c0_i32_0 = arith.constant 0 : i32
    %c0_i32_1 = arith.constant 0 : i32
    %c0_i32_2 = arith.constant 0 : i32
    return %c0_i32, %c0_i32_0, %c0_i32_1 : i32, i32, i32
  }
  func.func @transform_4(%arg0: i32) -> (i32, i32) {
    %c0_i32 = arith.constant 0 : i32
    %c0_i32_0 = arith.constant 0 : i32
    %c0_i32_1 = arith.constant 0 : i32
    return %c0_i32, %c0_i32_0 : i32, i32
  }
  func.func @transform_5(%arg0: i32) -> (i32, i32) {
    %c0_i32 = arith.constant 0 : i32
    %c0_i32_0 = arith.constant 0 : i32
    %c0_i32_1 = arith.constant 0 : i32
    return %c0_i32, %c0_i32_0 : i32, i32
  }
  func.func @transform_6(%arg0: i32) -> (i32, i32) {
    %c0_i32 = arith.constant 0 : i32
    %c0_i32_0 = arith.constant 0 : i32
    %c0_i32_1 = arith.constant 0 : i32
    return %c0_i32, %c0_i32_0 : i32, i32
  }
  func.func @transform_7(%arg0: i32) -> (i32, i32, i32) {
    %c0_i32 = arith.constant 0 : i32
    %c0_i32_0 = arith.constant 0 : i32
    %c0_i32_1 = arith.constant 0 : i32
    %c0_i32_2 = arith.constant 0 : i32
    return %c0_i32, %c0_i32_0, %c0_i32_1 : i32, i32, i32
  }
  func.func @transform_8(%arg0: i32) -> (i32, i32, i32) {
    %c0_i32 = arith.constant 0 : i32
    %c0_i32_0 = arith.constant 0 : i32
    %c0_i32_1 = arith.constant 0 : i32
    %c0_i32_2 = arith.constant 0 : i32
    return %c0_i32, %c0_i32_0, %c0_i32_1 : i32, i32, i32
  }
  func.func @transform_9(%arg0: i32) -> (i32, i32, i32) {
    %c0_i32 = arith.constant 0 : i32
    %c0_i32_0 = arith.constant 0 : i32
    %c0_i32_1 = arith.constant 0 : i32
    %c0_i32_2 = arith.constant 0 : i32
    return %c0_i32, %c0_i32_0, %c0_i32_1 : i32, i32, i32
  }
  func.func @transform_10(%arg0: i32) -> (i32, i32, i32) {
    %c0_i32 = arith.constant 0 : i32
    %c0_i32_0 = arith.constant 0 : i32
    %c0_i32_1 = arith.constant 0 : i32
    %c0_i32_2 = arith.constant 0 : i32
    return %c0_i32, %c0_i32_0, %c0_i32_1 : i32, i32, i32
  }
  func.func @transform_11(%arg0: i32) -> (i32, i32, i32) {
    %c0_i32 = arith.constant 0 : i32
    %c0_i32_0 = arith.constant 0 : i32
    %c0_i32_1 = arith.constant 0 : i32
    %c0_i32_2 = arith.constant 0 : i32
    return %c0_i32, %c0_i32_0, %c0_i32_1 : i32, i32, i32
  }
  func.func @transform_12(%arg0: i32) -> (i32, i32, i32) {
    %c0_i32 = arith.constant 0 : i32
    %c0_i32_0 = arith.constant 0 : i32
    %c0_i32_1 = arith.constant 0 : i32
    %c0_i32_2 = arith.constant 0 : i32
    return %c0_i32, %c0_i32_0, %c0_i32_1 : i32, i32, i32
  }
  func.func @transform_13(%arg0: i32) -> (i32, i32, i32) {
    %c0_i32 = arith.constant 0 : i32
    %c0_i32_0 = arith.constant 0 : i32
    %c0_i32_1 = arith.constant 0 : i32
    %c0_i32_2 = arith.constant 0 : i32
    return %c0_i32, %c0_i32_0, %c0_i32_1 : i32, i32, i32
  }
  func.func @transform_14(%arg0: i32) -> (i32, i32, i32) {
    %c0_i32 = arith.constant 0 : i32
    %c0_i32_0 = arith.constant 0 : i32
    %c0_i32_1 = arith.constant 0 : i32
    %c0_i32_2 = arith.constant 0 : i32
    return %c0_i32, %c0_i32_0, %c0_i32_1 : i32, i32, i32
  }
  func.func @transform_15(%arg0: i32) -> (i32, i32, i32) {
    %c0_i32 = arith.constant 0 : i32
    %c0_i32_0 = arith.constant 0 : i32
    %c0_i32_1 = arith.constant 0 : i32
    %c0_i32_2 = arith.constant 0 : i32
    return %c0_i32, %c0_i32_0, %c0_i32_1 : i32, i32, i32
  }
  func.func @transform_16(%arg0: i32) -> (i32, i32, i32) {
    %c0_i32 = arith.constant 0 : i32
    %c0_i32_0 = arith.constant 0 : i32
    %c0_i32_1 = arith.constant 0 : i32
    %c0_i32_2 = arith.constant 0 : i32
    return %c0_i32, %c0_i32_0, %c0_i32_1 : i32, i32, i32
  }
  func.func @transform_17(%arg0: i32) -> (i32, i32, i32) {
    %c0_i32 = arith.constant 0 : i32
    %c0_i32_0 = arith.constant 0 : i32
    %c0_i32_1 = arith.constant 0 : i32
    %c0_i32_2 = arith.constant 0 : i32
    return %c0_i32, %c0_i32_0, %c0_i32_1 : i32, i32, i32
  }
  func.func @transform_18(%arg0: i32) -> (i32, i32, i32) {
    %c0_i32 = arith.constant 0 : i32
    %c0_i32_0 = arith.constant 0 : i32
    %c0_i32_1 = arith.constant 0 : i32
    %c0_i32_2 = arith.constant 0 : i32
    return %c0_i32, %c0_i32_0, %c0_i32_1 : i32, i32, i32
  }
  func.func @transform_19(%arg0: i32) -> (i32, i32) {
    %c0_i32 = arith.constant 0 : i32
    %c0_i32_0 = arith.constant 0 : i32
    %c0_i32_1 = arith.constant 0 : i32
    return %c0_i32, %c0_i32_0 : i32, i32
  }
  func.func @transform_20(%arg0: i32) -> (i32, i32) {
    %c0_i32 = arith.constant 0 : i32
    %c0_i32_0 = arith.constant 0 : i32
    %c0_i32_1 = arith.constant 0 : i32
    return %c0_i32, %c0_i32_0 : i32, i32
  }
  func.func @transform_21(%arg0: i32) -> (i32, i32) {
    %c0_i32 = arith.constant 0 : i32
    %c0_i32_0 = arith.constant 0 : i32
    %c0_i32_1 = arith.constant 0 : i32
    return %c0_i32, %c0_i32_0 : i32, i32
  }
}

</mosaic_0001>

<bundles_post_ra>
// kernel: knowledge_selector_forward.1
= control target key start
LH: loop header
LB: loop body
LE: loop exit
PB: predicated region body
PF: predicated region fallthrough
CT: control target
= control target key end

     0   :  { %s4539_s0 = inlined_call_operand.vmem [shape: f32[16,128], index: 0, kind: input, shape index: {}]   ;;  %s4540_s1 = inlined_call_operand.vmem [shape: f32[16,16], index: 1, kind: input, shape index: {}]   ;;  %s4541_s2 = inlined_call_operand.vmem [shape: f32[1,128], index: 2, kind: input, shape index: {}]   ;;  %s4542_s3 = inlined_call_operand.vmem [shape: f32[4,1,128], index: 3, kind: input, shape index: {}]   ;;  %s4543_s4 = inlined_call_operand.vmem [shape: f32[2,16], index: 4, kind: input, shape index: {}]   ;;  %s4544_s5 = inlined_call_operand.vmem [shape: f32[1,128], index: 5, kind: input, shape index: {}]   ;;  %s4545_s6 = inlined_call_operand.vmem [shape: f32[1,128], index: 6, kind: input, shape index: {}]   ;;  %s4546_s7 = inlined_call_operand.vmem [shape: bf16[2,128,384], index: 7, kind: input, shape index: {}]   ;;  %s4547_s8 = inlined_call_operand.vmem [shape: f32[2,1,384], index: 8, kind: input, shape index: {}]   ;;  %s4548_s9 = inlined_call_operand.vmem [shape: bf16[2,128,128], index: 9, kind: input, shape index: {}]   ;;  %s4549_s10 = inlined_call_operand.vmem [shape: f32[2,1,128], index: 10, kind: input, shape index: {}]   ;;  %s4550_s11 = inlined_call_operand.vmem [shape: f32[2,1,128], index: 11, kind: input, shape index: {}]   ;;  %s4551_s12 = inlined_call_operand.vmem [shape: f32[2,1,128], index: 12, kind: input, shape index: {}]   ;;  %s4552_s13 = inlined_call_operand.vmem [shape: bf16[2,128,128], index: 13, kind: input, shape index: {}]   ;;  %s4553_s14 = inlined_call_operand.vmem [shape: f32[2,1,128], index: 14, kind: input, shape index: {}]   ;;  %s4554_s15 = inlined_call_operand.vmem [shape: bf16[2,128,128], index: 15, kind: input, shape index: {}]   ;;  %s4555_s16 = inlined_call_operand.vmem [shape: f32[2,1,128], index: 16, kind: input, shape index: {}]   ;;  %s4556_s17 = inlined_call_operand.vmem [shape: f32[2,1,128], index: 17, kind: input, shape index: {}]   ;;  %s4557_s18 = inlined_call_operand.vmem [shape: f32[2,1,128], index: 18, kind: input, shape index: {}]   ;;  %s4558_s19 = inlined_call_operand.vmem [shape: bf16[128,128], index: 19, kind: input, shape index: {}]   ;;  %s4559_s20 = inlined_call_operand.vmem [shape: f32[1,128], index: 20, kind: input, shape index: {}]   ;;  %s4560_s21 = inlined_call_operand.hbm [shape: f32[2,128], index: 21, kind: output, shape index: {}]  }
   0x1   :  { %4565 = sst [smem:[#allocation5_spill]] %s4539_s0 }
   0x2   :  { %4566 = sst [smem:[#allocation6_spill]] %s4540_s1 }
   0x3   :  { %4567 = sst [smem:[#allocation7_spill]] %s4541_s2 }
   0x4   :  { %4568 = sst [smem:[#allocation8_spill]] %s4542_s3 }
   0x5   :  { %4569 = sst [smem:[#allocation9_spill]] %s4543_s4 }
   0x6   :  { %4570 = sst [smem:[#allocation10_spill]] %s4544_s5 }
   0x7   :  { %s4571_s26 = sld [smem:[#allocation5_spill]]  ;;  %v3359_v2 = vld [vmem:[%s4546_s7 + $0x4] ss:$12 sps:$4 sm:$0xff]   ;;  %v3361_v3 = vld [vmem:[%s4546_s7] ss:$12 sps:$4 sm:$0xff]   ;;  %v3596_v4 = vmov 0.0  }
   0x8   :  { %3049 = vmatprep.subr.bf16.mxu1 %v3596_v4  ;;  %v3362_v5 = vld [vmem:[%s4546_s7 + $0x8] ss:$12 sps:$4 sm:$0xff]   ;;  %301 = vmatprep.subr.bf16.mxu0 %v3359_v2 }
   0x9   :  { %v3363_v6 = vld [vmem:[%s4546_s7 + $0x1c] ss:$12 sps:$4 sm:$0xff]   ;;  %302 = vmatpush1.bf16.msra.mxu0 %v3361_v3  ;;  %3050 = vmatpush3.bf16.msra.mxu1 %v3362_v5 }
   0xa   :  { %303 = vmatprep.subr.bf16.mxu0 %v3363_v6  ;;  %3051 = vmatprep.subr.bf16.mxu1 %v3596_v4 }
   0xd   :  { %v71_v0 = vld [vmem:[%s4571_s26] sm:$0xff]  ;;  %v72_v1 = vld [vmem:[%s4571_s26 + $0x8] sm:$0xff] }
   0xe   :  { %75 = vadd.xlane.f32.xlu0 %v71_v0 }
  0x12   :  { %77 = vadd.xlane.f32.xlu0 %v72_v1 }
  0x13   :  { %26 = vsyncpa [#allocation3], 0  ;;  %s4572_s2 = sld [smem:[#allocation7_spill]]  ;;  %v3365_v18 = vld [vmem:[%s4546_s7 + $0x18] ss:$12 sps:$4 sm:$0xff]   ;;  %v3597_v33 = vmov 0   ;;  %v158_v56 = vlaneseq }
  0x14   :  { %v3366_v19 = vld [vmem:[%s4546_s7 + $0x20] ss:$12 sps:$4 sm:$0xff]   ;;  %304 = vmatpush1.bf16.msra.mxu0 %v3365_v18  ;;  %v3369_v21 = vld [vmem:[%s4546_s7 + $0x30] ss:$12 sps:$4 sm:$0xff]   ;;  %v3370_v22 = vld [vmem:[%s4546_s7 + $0x38] ss:$12 sps:$4 sm:$0xff]   ;;  %333 = vmatprep.mubr.bf16.mxu0 %v3597_v33 }
  0x15   :  { %3052 = vmatpush3.bf16.msra.mxu1 %v3366_v19  ;;  %v3367_v20 = vld [vmem:[%s4546_s7 + $0x34] ss:$12 sps:$4 sm:$0xff]   ;;  %v3371_v23 = vld [vmem:[%s4546_s7 + $0x4c] ss:$12 sps:$4 sm:$0xff]   ;;  %v3374_v25 = vld [vmem:[%s4546_s7 + $0x50] ss:$12 sps:$4 sm:$0xff]  }
  0x16   :  { %3053 = vmatprep.subr.bf16.mxu1 %v3596_v4  ;;  %305 = vmatprep.subr.bf16.mxu0 %v3367_v20  ;;  %v3373_v24 = vld [vmem:[%s4546_s7 + $0x48] ss:$12 sps:$4 sm:$0xff]   ;;  %v3375_v26 = vld [vmem:[%s4546_s7 + $0x64] ss:$12 sps:$4 sm:$0xff]   ;;  %v3377_v27 = vld [vmem:[%s4546_s7 + $0x60] ss:$12 sps:$4 sm:$0xff]  }
  0x17   :  { %v3378_v28 = vld [vmem:[%s4546_s7 + $0x68] ss:$12 sps:$4 sm:$0xff]   ;;  %v3381_v30 = vld [vmem:[%s4546_s7 + $0x78] ss:$12 sps:$4 sm:$0xff]   ;;  %v3382_v31 = vld [vmem:[%s4546_s7 + $0x80] ss:$12 sps:$4 sm:$0xff]  }
  0x18   :  { %306 = vmatpush1.bf16.msra.mxu0 %v3369_v21  ;;  %v3379_v29 = vld [vmem:[%s4546_s7 + $0x7c] ss:$12 sps:$4 sm:$0xff]   ;;  %v3383_v32 = vld [vmem:[%s4546_s7 + $0x94] ss:$12 sps:$4 sm:$0xff]   ;;  %vm3598_vm0 = vmmov 0   ;;  %s4573_s25 = sld [smem:[#allocation10_spill]] }
  0x19   :  { %v3733_v9 = vld [vmem:[%s4572_s2] ss:$0 sm:$0xff]  ;;  %3054 = vmatpush3.bf16.msra.mxu1 %v3370_v22  ;;  %307 = vmatprep.subr.bf16.mxu0 %v3371_v23  ;;  %v3385_v34 = vld [vmem:[%s4546_s7 + $0x90] ss:$12 sps:$4 sm:$0xff]   ;;  %v3386_v35 = vld [vmem:[%s4546_s7 + $0x98] ss:$12 sps:$4 sm:$0xff]  }
  0x1a   :  { %3055 = vmatprep.subr.bf16.mxu1 %v3596_v4  ;;  %3065 = vmatprep.mubr.msk.bf16.mxu1 %vm3598_vm0, %v3596_v4  ;;  %v3387_v36 = vld [vmem:[%s4546_s7 + $0xac] ss:$12 sps:$4 sm:$0xff]   ;;  %v3389_v37 = vld [vmem:[%s4546_s7 + $0xa8] ss:$12 sps:$4 sm:$0xff]   ;;  %v3390_v38 = vld [vmem:[%s4546_s7 + $0xb0] ss:$12 sps:$4 sm:$0xff]  }
  0x1b   :  { %v2710_v51 = vld [vmem:[%s4545_s6] ss:$0 sm:$0xff]  ;;  %v3834_v57 = vshrl.u32 %v158_v56, 7  ;;  %s4574_s0 = sld [smem:[#allocation8_spill]]  ;;  %s4575_s26 = sld [smem:[#allocation6_spill]]  ;;  %vm441_vm1 = vcmask 130048  }
  0x1c   :  { %308 = vmatpush1.bf16.msra.mxu0 %v3373_v24  ;;  %v156_v59 = vld [vmem:[%s4547_s8] sm:$0x7] }
  0x1d   :  { %3056 = vmatpush3.bf16.msra.mxu1 %v3374_v25  ;;  %309 = vmatprep.subr.bf16.mxu0 %v3375_v26  ;;  %v160_v58 = vsub.s32 0, %v3834_v57  ;;  %v168_v60 = vsub.s32 2, %v3834_v57  ;;  %v164_v61 = vsub.s32 1, %v3834_v57 }
  0x1e   :  { %3057 = vmatprep.subr.bf16.mxu1 %v3596_v4  ;;  %v2709_v47 = vld [vmem:[%s4573_s25] ss:$0 sm:$0xff] }
  0x1f   :  { %v161_v62 = vrot.slane %v156_v59, %v160_v58  ;;  %v169_v63 = vrot.slane %v156_v59, %v168_v60  ;;  %v165_v3 = vrot.slane %v156_v59, %v164_v61 }
  0x20   :  { %310 = vmatpush1.bf16.msra.mxu0 %v3377_v27 }
  0x21   :  { %3058 = vmatpush3.bf16.msra.mxu1 %v3378_v28  ;;  %311 = vmatprep.subr.bf16.mxu0 %v3379_v29  ;;  %v3856_v6 = vld [vmem:[%s4574_s0 + $0x1] ss:$0 sm:$0xff] }
  0x22   :  { %3059 = vmatprep.subr.bf16.mxu1 %v3596_v4 }
  0x24   :  { %312 = vmatpush1.bf16.msra.mxu0 %v3381_v30 }
  0x25   :  { %3060 = vmatpush3.bf16.msra.mxu1 %v3382_v31  ;;  %313 = vmatprep.subr.bf16.mxu0 %v3383_v32 }
  0x26   :  { %3061 = vmatprep.subr.bf16.mxu1 %v3596_v4 }
  0x28   :  { %314 = vmatpush1.bf16.msra.mxu0 %v3385_v34 }
  0x29   :  { %3062 = vmatpush3.bf16.msra.mxu1 %v3386_v35  ;;  %315 = vmatprep.subr.bf16.mxu0 %v3387_v36 }
  0x2a   :  { %3063 = vmatprep.subr.bf16.mxu1 %v3596_v4 }
  0x2c   :  { %316 = vmatpush1.bf16.msra.mxu0 %v3389_v37 }
  0x2d   :  { %3064 = vmatpush3.bf16.msra.mxu1 %v3390_v38  ;;  %3081 = vmatprep.subr.bf16.mxu0 %v3596_v4 }
  0x2e   :  { %3069 = vmatprep.subr.bf16.mxu1 %v3596_v4 }
  0x9b   :  { %v76_v7 = vpop.xlane.xlu0 %75 }
  0x9c   :  { %v79_v8 = vmul.f32 0.03125, %v76_v7  ;;  %v3861_v7 = vld [vmem:[%s4574_s0 + $0x2] ss:$0 sm:$0xff] }
  0x9e   :  { %v81_v10 = vsub.f32 %v71_v0, %v79_v8 }
  0x9f   :  { %v78_v11 = vpop.xlane.xlu0 %77 }
  0xa0   :  { %v80_v12 = vmul.f32 0.03125, %v78_v11  ;;  %v3736_v13 = vmul.f32 %v3733_v9, %v81_v10  ;;  %v3866_v11 = vld [vmem:[%s4574_s0 + $0x3] ss:$0 sm:$0xff] }
  0xa2   :  { %v82_v14 = vsub.f32 %v72_v1, %v80_v12  ;;  %v91_v15 = vmul.f32 %v3736_v13, %v3736_v13  ;;  %v3849_v1 = vld [vmem:[%s4574_s0] ss:$0 sm:$0xff]  ;;  %s3599_s0 = smov [#allocation2]  }
  0xa4   :  { %93 = vadd.xlane.f32.xlu1 %v91_v15  ;;  %v3741_v16 = vmul.f32 %v3733_v9, %v82_v14 }
  0xa6   :  { %v92_v17 = vmul.f32 %v3741_v16, %v3741_v16 }
  0xa8   :  { %95 = vadd.xlane.f32.xlu1 %v92_v17 }
 0x131   :  { %v94_v39 = vpop.xlane.xlu1 %93 }
 0x132   :  { %v97_v40 = vmul.f32 0.03125, %v94_v39 }
 0x134   :  { %v99_v41 = vadd.f32 1e-12, %v97_v40 }
 0x135   :  { %v96_v42 = vpop.xlane.xlu1 %95 }
 0x136   :  { %3479 = vrsqrt.f32 %v99_v41  ;;  %v98_v43 = vmul.f32 0.03125, %v96_v42 }
 0x138   :  { %v100_v44 = vadd.f32 1e-12, %v98_v43 }
 0x13a   :  { %3481 = vrsqrt.f32 %v100_v44 }
 0x140   :  { %v3480_v45 = vpop.eup %3479 }
 0x141   :  { %v103_v46 = vmul.f32 %v3480_v45, %v3736_v13 }
 0x143   :  { %v111_v50 = vmul.f32 %v2709_v47, %v103_v46 }
 0x144   :  { %v3482_v48 = vpop.eup %3481 }
 0x145   :  { %v104_v49 = vmul.f32 %v3482_v48, %v3741_v16  ;;  %v3824_v53 = vadd.f32 %v2710_v51, %v111_v50 }
 0x147   :  { %v112_v52 = vmul.f32 %v2709_v47, %v104_v49 }
 0x149   :  { %v3826_v54 = vadd.f32 %v2710_v51, %v112_v52 }
 0x14b   :  { %v155_v55 = vpack.c.bf16 %v3826_v54, %v3824_v53 }
 0x14d   :  { %334 = vmatmul.mubr.bf16.vlgmr.msra.gmra.mrb[0].mxu0 %v155_v55  ;;  %3066 = vmatmul.mubr.bf16.vlgmr.msra.gmra.mrb[0].mxu1 %v155_v55 }
 0x14e   :  { %3071 = vmatprep.mubr.msk.bf16.mxu1 %vm3598_vm0, %v3596_v4  ;;  %3083 = vmatprep.mubr.msk.bf16.mxu0 %vm3598_vm0, %v3596_v4 }
 0x220   :  { %v335_v0 = vpop.f32.mrb[0].mxu0  ;;  %v378_v2 = vpop.f32.mrb[0].mxu1 }
 0x221   :  { %v336_v5 = vadd.f32 %v335_v0, %v161_v62  ;;  %v337_v8 = vpop.f32.mrb[1].mxu0  ;;  %v3067_v10 = vpop.f32.mrb[1].mxu1  ;;  %v379_v12 = vadd.f32 %v378_v2, %v169_v63 }
 0x222   :  { %v339_v13 = vpop.f32.mrb[2].mxu0  ;;  %v381_v14 = vpop.f32.mrb[2].mxu1  ;;  %v338_v20 = vadd.f32 %v337_v8, %v165_v3 }
 0x223   :  { %v341_v15 = vpop.f32.mrb[3].mxu0  ;;  %v3068_v16 = vpop.f32.mrb[3].mxu1  ;;  %v393_v17 = vmul.f32 %v3849_v1, %v336_v5  ;;  %v476_v18 = vmul.f32 %v3856_v6, %v336_v5  ;;  %v646_v19 = vmul.f32 %v3861_v7, %v336_v5  ;;  %v774_v21 = vmul.f32 %v3866_v11, %v336_v5  ;;  %v3924_v5 = vld [vmem:[%s4575_s26 + $0x8] sm:$0xff] }
 0x224   :  { %v340_v22 = vadd.f32 %v339_v13, %v161_v62  ;;  %v382_v23 = vadd.f32 %v381_v14, %v169_v63  ;;  %v342_v24 = vadd.f32 %v341_v15, %v165_v3  ;;  %v3873_v25 = vmul.f32 %v3849_v1, %v379_v12  ;;  %v3918_v62 = vld [vmem:[%s4575_s26] sm:$0xff] }
 0x225   :  { %v546_v26 = vmul.f32 %v3856_v6, %v379_v12  ;;  %v3877_v27 = vmul.f32 %v3861_v7, %v379_v12  ;;  %v3880_v28 = vmul.f32 %v3866_v11, %v379_v12 }
 0x226   :  { %v394_v29 = vmul.f32 %v3849_v1, %v340_v22  ;;  %v477_v30 = vmul.f32 %v3856_v6, %v340_v22  ;;  %v647_v31 = vmul.f32 %v3861_v7, %v340_v22  ;;  %v775_v32 = vmul.f32 %v3866_v11, %v340_v22 }
 0x227   :  { %v3887_v34 = vmul.f32 %v3849_v1, %v382_v23  ;;  %v547_v35 = vmul.f32 %v3856_v6, %v382_v23  ;;  %v3891_v36 = vmul.f32 %v3861_v7, %v382_v23  ;;  %v3894_v37 = vmul.f32 %v3866_v11, %v382_v23 }
 0x228   :  { %v385_v38 = vpack.c.bf16 %v342_v24, %v338_v20  ;;  %v395_v39 = vpack.c.bf16 %v394_v29, %v393_v17  ;;  %v478_v40 = vpack.c.bf16 %v477_v30, %v476_v18  ;;  %v648_v41 = vpack.c.bf16 %v647_v31, %v646_v19 }
 0x229   :  { %v548_v42 = vpack.c.bf16 %v547_v35, %v546_v26  ;;  %v776_v43 = vpack.c.bf16 %v775_v32, %v774_v21  ;;  %v466_v44 = vpack.c.bf16 %v3887_v34, %v3873_v25  ;;  %v718_v45 = vpack.c.bf16 %v3891_v36, %v3877_v27 }
 0x22a   :  { %3070 = vmatpush3.bf16.xpose.msra.mxu1 %v385_v38  ;;  %v846_v46 = vpack.c.bf16 %v3894_v37, %v3880_v28  ;;  %v3398_v28 = vld [vmem:[%s4548_s9 + $0x38] sm:$0xff]  }
 0x22b   :  { %3082 = vmatpush3.bf16.msra.mxu0 %v548_v42  ;;  %3075 = vmatprep.subr.bf16.mxu1 %v3596_v4 }
 0x22c   :  { %3087 = vmatprep.subr.bf16.mxu0 %v3596_v4 }
 0x231   :  { %3072 = vmatmul.mubr.bf16.vlgmr.msra.gmra.mrb[4].mxu1 %v395_v39 }
 0x232   :  { %3076 = vmatpush3.bf16.xpose.msra.mxu1 %v385_v38  ;;  %3077 = vmatprep.mubr.msk.bf16.mxu1 %vm3598_vm0, %v3596_v4 }
 0x233   :  { %3093 = vmatprep.subr.bf16.mxu1 %v3596_v4 }
 0x239   :  { %3078 = vmatmul.mubr.bf16.vlgmr.msra.gmra.mrb[8].mxu1 %v478_v40 }
 0x23a   :  { %3094 = vmatpush3.bf16.xpose.msra.mxu1 %v385_v38  ;;  %3095 = vmatprep.mubr.msk.bf16.mxu1 %vm3598_vm0, %v3596_v4 }
 0x23b   :  { %3105 = vmatprep.subr.bf16.mxu1 %v3596_v4 }
 0x241   :  { %3096 = vmatmul.mubr.bf16.vlgmr.msra.gmra.mrb[12].mxu1 %v648_v41 }
 0x242   :  { %3106 = vmatpush3.bf16.xpose.msra.mxu1 %v385_v38  ;;  %3107 = vmatprep.mubr.msk.bf16.mxu1 %vm3598_vm0, %v3596_v4 }
 0x243   :  { %3117 = vmatprep.subr.bf16.mxu1 %v3596_v4 }
 0x249   :  { %3108 = vmatmul.mubr.bf16.vlgmr.msra.gmra.mrb[16].mxu1 %v776_v43 }
 0x24a   :  { %3133 = vmatprep.mubr.msk.bf16.mxu1 %vm3598_vm0, %v3596_v4 }
 0x304   :  { %v430_v47 = vpop.f32.mrb[4].mxu1 }
 0x305   :  { %v3073_v48 = vpop.f32.mrb[5].mxu1  ;;  %v437_v52 = vmul.f32 0.35355338, %v430_v47 }
 0x306   :  { %v433_v49 = vpop.f32.mrb[6].mxu1 }
 0x307   :  { %v3074_v50 = vpop.f32.mrb[7].mxu1  ;;  %v438_v63 = vmul.f32 0.35355338, %v433_v49  ;;  %v439_v12 = vadd.f32 %v437_v52, %v3918_v62 }
 0x309   :  { %v440_v14 = vadd.f32 %v438_v63, %v3924_v5  ;;  %v442_v18 = vsel %vm441_vm1, %v439_v12, -inf }
 0x30b   :  { %v445_v22 = vsel %vm441_vm1, %v440_v14, -inf }
 0x30c   :  { %v513_v51 = vpop.f32.mrb[8].mxu1 }
 0x30d   :  { %v520_v55 = vmul.f32 0.35355338, %v513_v51  ;;  %v3079_v56 = vpop.f32.mrb[9].mxu1 }
 0x30e   :  { %v516_v59 = vpop.f32.mrb[10].mxu1 }
 0x30f   :  { %v521_v0 = vmul.f32 0.35355338, %v516_v59  ;;  %v3080_v2 = vpop.f32.mrb[11].mxu1  ;;  %v522_v3 = vadd.f32 %v520_v55, %v3918_v62 }
 0x311   :  { %v524_v8 = vsel %vm441_vm1, %v522_v3, -inf  ;;  %v523_v10 = vadd.f32 %v521_v0, %v3924_v5 }
 0x312   :  { %525 = vmax.xlane.f32.xlu0 %v524_v8 }
 0x313   :  { %v527_v13 = vsel %vm441_vm1, %v523_v10, -inf }
 0x314   :  { %528 = vmax.xlane.f32.xlu1 %v527_v13  ;;  %v683_v15 = vpop.f32.mrb[12].mxu1 }
 0x315   :  { %v690_v16 = vmul.f32 0.35355338, %v683_v15  ;;  %v3097_v17 = vpop.f32.mrb[13].mxu1 }
 0x316   :  { %443 = vmax.xlane.f32.xlu0 %v442_v18  ;;  %v686_v19 = vpop.f32.mrb[14].mxu1 }
 0x317   :  { %v691_v20 = vmul.f32 0.35355338, %v686_v19  ;;  %v3098_v21 = vpop.f32.mrb[15].mxu1  ;;  %v692_v23 = vadd.f32 %v690_v16, %v3918_v62 }
 0x318   :  { %446 = vmax.xlane.f32.xlu1 %v445_v22 }
 0x319   :  { %v694_v24 = vsel %vm441_vm1, %v692_v23, -inf  ;;  %v693_v26 = vadd.f32 %v691_v20, %v3924_v5 }
 0x31a   :  { %695 = vmax.xlane.f32.xlu0 %v694_v24 }
 0x31b   :  { %v697_v29 = vsel %vm441_vm1, %v693_v26, -inf }
 0x31c   :  { %698 = vmax.xlane.f32.xlu1 %v697_v29  ;;  %v811_v30 = vpop.f32.mrb[16].mxu1 }
 0x31d   :  { %v818_v31 = vmul.f32 0.35355338, %v811_v30  ;;  %v3109_v32 = vpop.f32.mrb[17].mxu1 }
 0x31e   :  { %v814_v35 = vpop.f32.mrb[18].mxu1 }
 0x31f   :  { %v819_v38 = vmul.f32 0.35355338, %v814_v35  ;;  %v3110_v39 = vpop.f32.mrb[19].mxu1  ;;  %v820_v40 = vadd.f32 %v818_v31, %v3918_v62 }
 0x321   :  { %v822_v41 = vsel %vm441_vm1, %v820_v40, -inf  ;;  %v821_v42 = vadd.f32 %v819_v38, %v3924_v5 }
 0x322   :  { %823 = vmax.xlane.f32.xlu0 %v822_v41 }
 0x323   :  { %v825_v43 = vsel %vm441_vm1, %v821_v42, -inf }
 0x324   :  { %826 = vmax.xlane.f32.xlu1 %v825_v43 }
 0x39f   :  { %v526_v47 = vpop.xlane.xlu0 %525 }
 0x3a0   :  { %v530_v48 = vsub.f32 %v522_v3, %v526_v47  ;;  %v3391_v47 = vld [vmem:[%s4548_s9] sm:$0xff]  }
 0x3a1   :  { %v529_v49 = vpop.xlane.xlu1 %528  ;;  %3118 = vmatpush3.bf16.msra.mxu1 %v3391_v47 }
 0x3a2   :  { %v532_v50 = vmul.f32 1.442695, %v530_v48  ;;  %v531_v51 = vsub.f32 %v523_v10, %v529_v49  ;;  %v3392_v48 = vld [vmem:[%s4548_s9 + $0x8] sm:$0xff]   ;;  %3119 = vmatprep.subr.bf16.mxu1 %v3596_v4  ;;  %v3393_v49 = vld [vmem:[%s4548_s9 + $0x10] sm:$0xff]  }
 0x3a3   :  { %v444_v52 = vpop.xlane.xlu0 %443 }
 0x3a4   :  { %3483 = vpow2.f32 %v532_v50  ;;  %v534_v55 = vmul.f32 1.442695, %v531_v51  ;;  %v448_v56 = vsub.f32 %v439_v12, %v444_v52  ;;  %v3394_v50 = vld [vmem:[%s4548_s9 + $0x18] sm:$0xff]   ;;  %v3395_v51 = vld [vmem:[%s4548_s9 + $0x20] sm:$0xff]   ;;  %v3396_v52 = vld [vmem:[%s4548_s9 + $0x28] sm:$0xff]  }
 0x3a5   :  { %v447_v59 = vpop.xlane.xlu1 %446  ;;  %3120 = vmatpush3.bf16.msra.mxu1 %v3392_v48  ;;  %v3399_v48 = vld [vmem:[%s4552_s13] sm:$0xff]  }
 0x3a6   :  { %3485 = vpow2.f32 %v534_v55  ;;  %v450_v63 = vmul.f32 1.442695, %v448_v56  ;;  %v449_v0 = vsub.f32 %v440_v14, %v447_v59  ;;  %3121 = vmatprep.subr.bf16.mxu1 %v3596_v4  ;;  %v3397_v55 = vld [vmem:[%s4548_s9 + $0x30] sm:$0xff]  }
 0x3a7   :  { %v696_v2 = vpop.xlane.xlu0 %695 }
 0x3a8   :  { %3487 = vpow2.f32 %v450_v63  ;;  %v452_v8 = vmul.f32 1.442695, %v449_v0  ;;  %v700_v13 = vsub.f32 %v692_v23, %v696_v2 }
 0x3a9   :  { %v699_v15 = vpop.xlane.xlu1 %698  ;;  %3122 = vmatpush3.bf16.msra.mxu1 %v3393_v49  ;;  %v3400_v49 = vld [vmem:[%s4552_s13 + $0x8] sm:$0xff]  }
 0x3aa   :  { %3489 = vpow2.f32 %v452_v8  ;;  %v702_v16 = vmul.f32 1.442695, %v700_v13  ;;  %v701_v17 = vsub.f32 %v693_v26, %v699_v15  ;;  %3123 = vmatprep.subr.bf16.mxu1 %v3596_v4 }
 0x3ac   :  { %3491 = vpow2.f32 %v702_v16  ;;  %v704_v3 = vmul.f32 1.442695, %v701_v17 }
 0x3ad   :  { %3124 = vmatpush3.bf16.msra.mxu1 %v3394_v50 }
 0x3ae   :  { %v3941_v18 = vpop.eup %3483  ;;  %3493 = vpow2.f32 %v704_v3  ;;  %3125 = vmatprep.subr.bf16.mxu1 %v3596_v4 }
 0x3af   :  { %v824_v10 = vpop.xlane.xlu0 %823  ;;  %v536_v12 = vsel %vm441_vm1, %v3941_v18, 0.0 }
 0x3b0   :  { %v3486_v19 = vpop.eup %3485  ;;  %v828_v20 = vsub.f32 %v820_v40, %v824_v10  ;;  %537 = vadd.xlane.f32.xlu0 %v536_v12 }
 0x3b1   :  { %v827_v14 = vpop.xlane.xlu1 %826  ;;  %v539_v21 = vsel %vm441_vm1, %v3486_v19, 0.0  ;;  %3126 = vmatpush3.bf16.msra.mxu1 %v3395_v51 }
 0x3b2   :  { %v3946_v22 = vpop.eup %3487  ;;  %v830_v23 = vmul.f32 1.442695, %v828_v20  ;;  %v829_v24 = vsub.f32 %v821_v42, %v827_v14  ;;  %540 = vadd.xlane.f32.xlu1 %v539_v21  ;;  %3127 = vmatprep.subr.bf16.mxu1 %v3596_v4 }
 0x3b3   :  { %v454_v26 = vsel %vm441_vm1, %v3946_v22, 0.0 }
 0x3b4   :  { %v3490_v29 = vpop.eup %3489  ;;  %3495 = vpow2.f32 %v830_v23  ;;  %v832_v30 = vmul.f32 1.442695, %v829_v24  ;;  %455 = vadd.xlane.f32.xlu0 %v454_v26 }
 0x3b5   :  { %v457_v31 = vsel %vm441_vm1, %v3490_v29, 0.0  ;;  %3128 = vmatpush3.bf16.msra.mxu1 %v3396_v52 }
 0x3b6   :  { %v3951_v32 = vpop.eup %3491  ;;  %3497 = vpow2.f32 %v832_v30  ;;  %458 = vadd.xlane.f32.xlu1 %v457_v31  ;;  %3129 = vmatprep.subr.bf16.mxu1 %v3596_v4 }
 0x3b7   :  { %v706_v35 = vsel %vm441_vm1, %v3951_v32, 0.0 }
 0x3b8   :  { %v3955_v38 = vpop.eup %3493  ;;  %707 = vadd.xlane.f32.xlu0 %v706_v35 }
 0x3b9   :  { %v709_v39 = vsel %vm441_vm1, %v3955_v38, 0.0  ;;  %3130 = vmatpush3.bf16.msra.mxu1 %v3397_v55 }
 0x3ba   :  { %710 = vadd.xlane.f32.xlu1 %v709_v39  ;;  %3131 = vmatprep.subr.bf16.mxu1 %v3596_v4 }
 0x3bd   :  { %3132 = vmatpush3.bf16.msra.mxu1 %v3398_v28  ;;  %v3408_v28 = vld [vmem:[%s4554_s15 + $0x8] sm:$0xff]  }
 0x3be   :  { %v3959_v40 = vpop.eup %3495  ;;  %3157 = vmatprep.subr.bf16.mxu1 %v3596_v4 }
 0x3bf   :  { %v834_v41 = vsel %vm441_vm1, %v3959_v40, 0.0 }
 0x3c0   :  { %v3963_v42 = vpop.eup %3497  ;;  %835 = vadd.xlane.f32.xlu0 %v834_v41 }
 0x3c1   :  { %v837_v43 = vsel %vm441_vm1, %v3963_v42, 0.0 }
 0x3c2   :  { %838 = vadd.xlane.f32.xlu1 %v837_v43 }
 0x43d   :  { %v538_v56 = vpop.xlane.xlu0 %537 }
 0x43e   :  { %3499 = vrcp.f32 %v538_v56 }
 0x43f   :  { %v541_v59 = vpop.xlane.xlu1 %540 }
 0x440   :  { %3501 = vrcp.f32 %v541_v59 }
 0x441   :  { %v456_v0 = vpop.xlane.xlu0 %455 }
 0x443   :  { %v459_v63 = vpop.xlane.xlu1 %458 }
 0x444   :  { %3503 = vrcp.f32 %v459_v63 }
 0x445   :  { %3505 = vrcp.f32 %v456_v0  ;;  %v708_v10 = vpop.xlane.xlu0 %707 }
 0x447   :  { %v711_v17 = vpop.xlane.xlu1 %710 }
 0x448   :  { %v3500_v2 = vpop.eup %3499  ;;  %3507 = vrcp.f32 %v711_v17  ;;  %v3406_v17 = vld [vmem:[%s4552_s13 + $0x38] sm:$0xff]  }
 0x449   :  { %v544_v13 = vmul.f32 %v3500_v2, %v3941_v18  ;;  %3509 = vrcp.f32 %v708_v10  ;;  %v3401_v2 = vld [vmem:[%s4552_s13 + $0x10] sm:$0xff]  }
 0x44a   :  { %v3502_v8 = vpop.eup %3501 }
 0x44b   :  { %v545_v15 = vmul.f32 %v3502_v8, %v3486_v19  ;;  %v3402_v8 = vld [vmem:[%s4552_s13 + $0x18] sm:$0xff]  }
 0x44d   :  { %v549_v16 = vpack.c.bf16 %v545_v15, %v544_v13  ;;  %v3403_v13 = vld [vmem:[%s4552_s13 + $0x20] sm:$0xff]   ;;  %v3404_v15 = vld [vmem:[%s4552_s13 + $0x28] sm:$0xff]  }
 0x44e   :  { %v3504_v3 = vpop.eup %3503 }
 0x44f   :  { %3084 = vmatmul.mubr.msk.bf16.vlgmr.msra.gmra.mrb[4].mxu0 %vm441_vm1, %v549_v16  ;;  %v3506_v12 = vpop.eup %3505  ;;  %v463_v20 = vmul.f32 %v3504_v3, %v3490_v29  ;;  %v839_v25 = vpop.xlane.xlu1 %838  ;;  %v3405_v16 = vld [vmem:[%s4552_s13 + $0x30] sm:$0xff]  }
 0x450   :  { %3088 = vmatpush3.bf16.msra.mxu0 %v466_v44  ;;  %3089 = vmatprep.mubr.msk.bf16.mxu0 %vm3598_vm0, %v3596_v4  ;;  %v462_v18 = vmul.f32 %v3506_v12, %v3946_v22  ;;  %v836_v44 = vpop.xlane.xlu0 %835  ;;  %3511 = vrcp.f32 %v839_v25 }
 0x451   :  { %3099 = vmatprep.subr.bf16.mxu0 %v3596_v4  ;;  %3513 = vrcp.f32 %v836_v44 }
 0x452   :  { %v467_v19 = vpack.c.bf16 %v463_v20, %v462_v18  ;;  %v3508_v34 = vpop.eup %3507 }
 0x453   :  { %v3510_v14 = vpop.eup %3509  ;;  %v715_v21 = vmul.f32 %v3508_v34, %v3955_v38  ;;  %v2755_v34 = vld [vmem:[%s4550_s11] ss:$0 sm:$0xff] }
 0x454   :  { %v714_v22 = vmul.f32 %v3510_v14, %v3951_v32  ;;  %v2746_v32 = vld [vmem:[%s4549_s10] ss:$0 sm:$0xff] }
 0x456   :  { %v719_v23 = vpack.c.bf16 %v715_v21, %v714_v22 }
 0x45a   :  { %v3512_v27 = vpop.eup %3511 }
 0x45b   :  { %3090 = vmatmul.mubr.msk.bf16.vlgmr.msra.gmra.mrb[4].mxu0 %vm441_vm1, %v467_v19  ;;  %v3514_v36 = vpop.eup %3513 }
 0x45c   :  { %3100 = vmatpush3.bf16.msra.mxu0 %v718_v45  ;;  %3101 = vmatprep.mubr.msk.bf16.mxu0 %vm3598_vm0, %v3596_v4  ;;  %v843_v45 = vmul.f32 %v3512_v27, %v3963_v42  ;;  %v842_v24 = vmul.f32 %v3514_v36, %v3959_v40 }
 0x45d   :  { %3111 = vmatprep.subr.bf16.mxu0 %v3596_v4 }
 0x45e   :  { %v847_v26 = vpack.c.bf16 %v843_v45, %v842_v24 }
 0x467   :  { %3102 = vmatmul.mubr.msk.bf16.vlgmr.msra.gmra.mrb[4].mxu0 %vm441_vm1, %v719_v23  ;;  %v2756_v23 = vld [vmem:[%s4551_s12] ss:$0 sm:$0xff] }
 0x468   :  { %3112 = vmatpush3.bf16.msra.mxu0 %v846_v46  ;;  %3113 = vmatprep.mubr.msk.bf16.mxu0 %vm3598_vm0, %v3596_v4 }
 0x469   :  { %3137 = vmatprep.subr.bf16.mxu0 %v3596_v4 }
 0x473   :  { %3114 = vmatmul.mubr.msk.bf16.vlgmr.msra.gmra.mrb[4].mxu0 %vm441_vm1, %v847_v26  ;;  %v3407_v26 = vld [vmem:[%s4554_s15] sm:$0xff]  }
 0x474   :  { %3153 = vmatprep.mubr.msk.bf16.mxu0 %vm3598_vm0, %v3596_v4  ;;  %3138 = vmatpush3.bf16.msra.mxu0 %v3399_v48 }
 0x475   :  { %3139 = vmatprep.subr.bf16.mxu0 %v3596_v4 }
 0x478   :  { %3140 = vmatpush3.bf16.msra.mxu0 %v3400_v49 }
 0x479   :  { %3141 = vmatprep.subr.bf16.mxu0 %v3596_v4 }
 0x47c   :  { %3142 = vmatpush3.bf16.msra.mxu0 %v3401_v2 }
 0x47d   :  { %3143 = vmatprep.subr.bf16.mxu0 %v3596_v4 }
 0x480   :  { %3144 = vmatpush3.bf16.msra.mxu0 %v3402_v8 }
 0x481   :  { %3145 = vmatprep.subr.bf16.mxu0 %v3596_v4 }
 0x484   :  { %3146 = vmatpush3.bf16.msra.mxu0 %v3403_v13 }
 0x485   :  { %3147 = vmatprep.subr.bf16.mxu0 %v3596_v4 }
 0x488   :  { %3148 = vmatpush3.bf16.msra.mxu0 %v3404_v15 }
 0x489   :  { %3149 = vmatprep.subr.bf16.mxu0 %v3596_v4 }
 0x48c   :  { %3150 = vmatpush3.bf16.msra.mxu0 %v3405_v16 }
 0x48d   :  { %3151 = vmatprep.subr.bf16.mxu0 %v3596_v4 }
 0x490   :  { %3152 = vmatpush3.bf16.msra.mxu0 %v3406_v17  ;;  %v2766_v17 = vld [vmem:[%s4555_s16] ss:$0 sm:$0xff] }
 0x546   :  { %v885_v37 = vpop.f32.mrb[4].mxu0 }
 0x547   :  { %v3115_v46 = vpop.f32.mrb[5].mxu0 }
 0x548   :  { %v888_v29 = vpop.f32.mrb[6].mxu0  ;;  %v3411_v46 = vld [vmem:[%s4554_s15 + $0x20] sm:$0xff]  }
 0x549   :  { %v910_v30 = vpack.c.bf16 %v888_v29, %v885_v37  ;;  %v3116_v31 = vpop.f32.mrb[7].mxu0  ;;  %v3409_v37 = vld [vmem:[%s4554_s15 + $0x10] sm:$0xff]   ;;  %v3412_v29 = vld [vmem:[%s4554_s15 + $0x28] sm:$0xff]  }
 0x54a   :  { %v3414_v31 = vld [vmem:[%s4554_s15 + $0x38] sm:$0xff]  }
 0x54b   :  { %3134 = vmatmul.mubr.bf16.vlgmr.msra.gmra.mrb[20].mxu1 %v910_v30  ;;  %v3413_v30 = vld [vmem:[%s4554_s15 + $0x30] sm:$0xff]  }
 0x54c   :  { %3173 = vmatprep.mubr.msk.bf16.mxu1 %vm3598_vm0, %v3596_v4  ;;  %3158 = vmatpush3.bf16.msra.mxu1 %v3407_v26 }
 0x54d   :  { %3159 = vmatprep.subr.bf16.mxu1 %v3596_v4 }
 0x550   :  { %3160 = vmatpush3.bf16.msra.mxu1 %v3408_v28 }
 0x551   :  { %3161 = vmatprep.subr.bf16.mxu1 %v3596_v4 }
 0x554   :  { %3162 = vmatpush3.bf16.msra.mxu1 %v3409_v37 }
 0x555   :  { %3163 = vmatprep.subr.bf16.mxu1 %v3596_v4 }
 0x61e   :  { %v1000_v35 = vpop.f32.mrb[20].mxu1 }
 0x61f   :  { %v1001_v38 = vadd.f32 %v2746_v32, %v1000_v35  ;;  %v3135_v39 = vpop.f32.mrb[21].mxu1 }
 0x620   :  { %v1003_v40 = vpop.f32.mrb[22].mxu1 }
 0x621   :  { %v1004_v41 = vadd.f32 %v2746_v32, %v1003_v40  ;;  %v3136_v42 = vpop.f32.mrb[23].mxu1  ;;  %v1007_v43 = vadd.f32 %v1001_v38, %v3824_v53  ;;  %v2757_v32 = vld [vmem:[%s4553_s14] ss:$0 sm:$0xff] }
 0x623   :  { %1011 = vadd.xlane.f32.xlu0 %v1007_v43  ;;  %v1008_v47 = vadd.f32 %v1004_v41, %v3826_v54 }
 0x625   :  { %1013 = vadd.xlane.f32.xlu1 %v1008_v47 }
 0x6b0   :  { %v1012_v50 = vpop.xlane.xlu0 %1011 }
 0x6b1   :  { %v1015_v53 = vmul.f32 0.03125, %v1012_v50 }
 0x6b2   :  { %v1014_v51 = vpop.xlane.xlu1 %1013 }
 0x6b3   :  { %v1017_v52 = vsub.f32 %v1007_v43, %v1015_v53  ;;  %v1016_v54 = vmul.f32 0.03125, %v1014_v51 }
 0x6b5   :  { %v1018_v55 = vsub.f32 %v1008_v47, %v1016_v54  ;;  %v1019_v56 = vmul.f32 %v3733_v9, %v1017_v52 }
 0x6b7   :  { %v1021_v59 = vmul.f32 %v1019_v56, %v1019_v56  ;;  %v1020_v63 = vmul.f32 %v3733_v9, %v1018_v55 }
 0x6b9   :  { %1023 = vadd.xlane.f32.xlu0 %v1021_v59  ;;  %v1022_v0 = vmul.f32 %v1020_v63, %v1020_v63 }
 0x6bb   :  { %1025 = vadd.xlane.f32.xlu1 %v1022_v0 }
 0x746   :  { %v1024_v3 = vpop.xlane.xlu0 %1023 }
 0x747   :  { %v1027_v10 = vmul.f32 0.03125, %v1024_v3 }
 0x748   :  { %v1026_v12 = vpop.xlane.xlu1 %1025 }
 0x749   :  { %v1029_v20 = vadd.f32 1e-12, %v1027_v10  ;;  %v1028_v18 = vmul.f32 0.03125, %v1026_v12 }
 0x74b   :  { %3515 = vrsqrt.f32 %v1029_v20  ;;  %v1030_v19 = vadd.f32 1e-12, %v1028_v18 }
 0x74d   :  { %3517 = vrsqrt.f32 %v1030_v19 }
 0x755   :  { %v3516_v25 = vpop.eup %3515 }
 0x756   :  { %v1033_v44 = vmul.f32 %v3516_v25, %v1019_v56 }
 0x757   :  { %v3518_v14 = vpop.eup %3517 }
 0x758   :  { %v1034_v21 = vmul.f32 %v3518_v14, %v1020_v63  ;;  %v1041_v22 = vmul.f32 %v2755_v34, %v1033_v44  ;;  %v3415_v44 = vld [vmem:[%s4546_s7 + $0xc0] ss:$12 sps:$4 sm:$0xff]   ;;  %v3417_v14 = vld [vmem:[%s4546_s7 + $0xc4] ss:$12 sps:$4 sm:$0xff]  }
 0x759   :  { %1519 = vmatprep.subr.bf16.mxu0 %v3417_v14 }
 0x75a   :  { %v1042_v27 = vmul.f32 %v2755_v34, %v1034_v21  ;;  %v4075_v36 = vadd.f32 %v2756_v23, %v1041_v22  ;;  %v3418_v21 = vld [vmem:[%s4546_s7 + $0xc8] ss:$12 sps:$4 sm:$0xff]  }
 0x75b   :  { %v3421_v22 = vld [vmem:[%s4546_s7 + $0xdc] ss:$12 sps:$4 sm:$0xff]  }
 0x75c   :  { %v4077_v45 = vadd.f32 %v2756_v23, %v1042_v27  ;;  %v3422_v23 = vld [vmem:[%s4546_s7 + $0xe0] ss:$12 sps:$4 sm:$0xff]   ;;  %v3419_v27 = vld [vmem:[%s4546_s7 + $0xd8] ss:$12 sps:$4 sm:$0xff]  }
 0x75e   :  { %v1067_v24 = vpack.c.bf16 %v4077_v45, %v4075_v36 }
 0x760   :  { %3154 = vmatmul.mubr.bf16.vlgmr.msra.gmra.mrb[8].mxu0 %v1067_v24 }
 0x761   :  { %1551 = vmatprep.mubr.bf16.mxu0 %v3597_v33  ;;  %v3410_v33 = vld [vmem:[%s4554_s15 + $0x18] sm:$0xff]   ;;  %1520 = vmatpush1.bf16.msra.mxu0 %v3415_v44 }
 0x762   :  { %3164 = vmatpush3.bf16.msra.mxu1 %v3410_v33  ;;  %1521 = vmatprep.subr.bf16.mxu0 %v3421_v22 }
 0x763   :  { %3165 = vmatprep.subr.bf16.mxu1 %v3596_v4 }
 0x765   :  { %1522 = vmatpush1.bf16.msra.mxu0 %v3419_v27 }
 0x766   :  { %3166 = vmatpush3.bf16.msra.mxu1 %v3411_v46 }
 0x767   :  { %3167 = vmatprep.subr.bf16.mxu1 %v3596_v4 }
 0x76a   :  { %3168 = vmatpush3.bf16.msra.mxu1 %v3412_v29 }
 0x76b   :  { %3169 = vmatprep.subr.bf16.mxu1 %v3596_v4 }
 0x76e   :  { %3170 = vmatpush3.bf16.msra.mxu1 %v3413_v30 }
 0x76f   :  { %3171 = vmatprep.subr.bf16.mxu1 %v3596_v4 }
 0x772   :  { %3172 = vmatpush3.bf16.msra.mxu1 %v3414_v31  ;;  %v3425_v31 = vld [vmem:[%s4546_s7 + $0xf4] ss:$12 sps:$4 sm:$0xff]  }
 0x773   :  { %3177 = vmatprep.subr.bf16.mxu1 %v3596_v4  ;;  %1523 = vmatprep.subr.bf16.mxu0 %v3425_v31 }
 0x833   :  { %v1157_v35 = vpop.f32.mrb[8].mxu0 }
 0x834   :  { %v1158_v38 = vadd.f32 %v2757_v32, %v1157_v35  ;;  %v3155_v39 = vpop.f32.mrb[9].mxu0  ;;  %v3426_v35 = vld [vmem:[%s4546_s7 + $0xf8] ss:$12 sps:$4 sm:$0xff]  }
 0x835   :  { %v1160_v40 = vpop.f32.mrb[10].mxu0  ;;  %v3430_v39 = vld [vmem:[%s4546_s7 + $0x110] ss:$12 sps:$4 sm:$0xff]  }
 0x836   :  { %v1166_v41 = vmul.f32 0.044715, %v1158_v38  ;;  %v1161_v42 = vadd.f32 %v2757_v32, %v1160_v40  ;;  %v3156_v43 = vpop.f32.mrb[11].mxu0  ;;  %v1164_v0 = vmul.f32 0.5, %v1158_v38  ;;  %v3423_v32 = vld [vmem:[%s4546_s7 + $0xf0] ss:$12 sps:$4 sm:$0xff]  }
 0x837   :  { %1524 = vmatpush1.bf16.msra.mxu0 %v3423_v32  ;;  %v3433_v40 = vld [vmem:[%s4546_s7 + $0x124] ss:$12 sps:$4 sm:$0xff]   ;;  %v3437_v43 = vld [vmem:[%s4546_s7 + $0x13c] ss:$12 sps:$4 sm:$0xff]  }
 0x838   :  { %v1168_v47 = vmul.f32 %v1166_v41, %v1158_v38  ;;  %v1167_v48 = vmul.f32 0.044715, %v1161_v42  ;;  %v1165_v2 = vmul.f32 0.5, %v1161_v42  ;;  %v3431_v41 = vld [vmem:[%s4546_s7 + $0x120] ss:$12 sps:$4 sm:$0xff]  }
 0x83a   :  { %v1170_v49 = vmul.f32 %v1168_v47, %v1158_v38  ;;  %v1169_v50 = vmul.f32 %v1167_v48, %v1161_v42  ;;  %v3435_v47 = vld [vmem:[%s4546_s7 + $0x138] ss:$12 sps:$4 sm:$0xff]   ;;  %v3438_v48 = vld [vmem:[%s4546_s7 + $0x140] ss:$12 sps:$4 sm:$0xff]  }
 0x83c   :  { %v1172_v53 = vadd.f32 %v1170_v49, %v1158_v38  ;;  %v1171_v51 = vmul.f32 %v1169_v50, %v1161_v42  ;;  %v3427_v38 = vld [vmem:[%s4546_s7 + $0x108] ss:$12 sps:$4 sm:$0xff]   ;;  %v3439_v50 = vld [vmem:[%s4546_s7 + $0x150] ss:$12 sps:$4 sm:$0xff]  }
 0x83d   :  { %v3441_v49 = vld [vmem:[%s4546_s7 + $0x154] ss:$12 sps:$4 sm:$0xff]  }
 0x83e   :  { %v1174_v52 = vmul.f32 0.7978846, %v1172_v53  ;;  %v1173_v54 = vadd.f32 %v1171_v51, %v1161_v42  ;;  %v3434_v42 = vld [vmem:[%s4546_s7 + $0x128] ss:$12 sps:$4 sm:$0xff]   ;;  %v3442_v53 = vld [vmem:[%s4546_s7 + $0x158] ss:$12 sps:$4 sm:$0xff]  }
 0x83f   :  { %v3445_v51 = vld [vmem:[%s4546_s7 + $0x16c] ss:$12 sps:$4 sm:$0xff]  }
 0x840   :  { %3519 = vtanh.f32 %v1174_v52  ;;  %v1175_v55 = vmul.f32 0.7978846, %v1173_v54  ;;  %v3443_v52 = vld [vmem:[%s4546_s7 + $0x168] ss:$12 sps:$4 sm:$0xff]   ;;  %v3446_v54 = vld [vmem:[%s4546_s7 + $0x170] ss:$12 sps:$4 sm:$0xff]  }
 0x842   :  { %3521 = vtanh.f32 %v1175_v55 }
 0x84a   :  { %v3520_v56 = vpop.eup %3519 }
 0x84b   :  { %v1178_v59 = vadd.f32 1.0, %v3520_v56 }
 0x84c   :  { %v3522_v63 = vpop.eup %3521 }
 0x84d   :  { %v1179_v8 = vadd.f32 1.0, %v3522_v63  ;;  %v1180_v13 = vmul.f32 %v1178_v59, %v1164_v0 }
 0x84f   :  { %v1181_v15 = vmul.f32 %v1179_v8, %v1165_v2 }
 0x851   :  { %v1198_v16 = vpack.c.bf16 %v1181_v15, %v1180_v13  ;;  %v2775_v13 = vld [vmem:[%s4556_s17] ss:$0 sm:$0xff] }
 0x853   :  { %3174 = vmatmul.mubr.bf16.vlgmr.msra.gmra.mrb[24].mxu1 %v1198_v16 }
 0x854   :  { %3193 = vmatprep.mubr.msk.bf16.mxu1 %vm3598_vm0, %v3596_v4  ;;  %3178 = vmatpush3.bf16.msra.mxu1 %v3418_v21 }
 0x855   :  { %3179 = vmatprep.subr.bf16.mxu1 %v3596_v4 }
 0x858   :  { %3180 = vmatpush3.bf16.msra.mxu1 %v3422_v23 }
 0x859   :  { %3181 = vmatprep.subr.bf16.mxu1 %v3596_v4 }
 0x85c   :  { %3182 = vmatpush3.bf16.msra.mxu1 %v3426_v35 }
 0x85d   :  { %3183 = vmatprep.subr.bf16.mxu1 %v3596_v4 }
 0x860   :  { %3184 = vmatpush3.bf16.msra.mxu1 %v3430_v39 }
 0x861   :  { %3185 = vmatprep.subr.bf16.mxu1 %v3596_v4 }
 0x864   :  { %3186 = vmatpush3.bf16.msra.mxu1 %v3434_v42 }
 0x865   :  { %3187 = vmatprep.subr.bf16.mxu1 %v3596_v4 }
 0x868   :  { %3188 = vmatpush3.bf16.msra.mxu1 %v3438_v48 }
 0x869   :  { %3189 = vmatprep.subr.bf16.mxu1 %v3596_v4 }
 0x86c   :  { %3190 = vmatpush3.bf16.msra.mxu1 %v3442_v53 }
 0x86d   :  { %3191 = vmatprep.subr.bf16.mxu1 %v3596_v4 }
 0x870   :  { %3192 = vmatpush3.bf16.msra.mxu1 %v3446_v54 }
 0x871   :  { %3221 = vmatprep.subr.bf16.mxu1 %v3596_v4 }
 0x926   :  { %v1288_v3 = vpop.f32.mrb[24].mxu1 }
 0x927   :  { %v1289_v10 = vadd.f32 %v2766_v17, %v1288_v3  ;;  %v3175_v12 = vpop.f32.mrb[25].mxu1 }
 0x928   :  { %v1291_v20 = vpop.f32.mrb[26].mxu1 }
 0x929   :  { %v1292_v18 = vadd.f32 %v2766_v17, %v1291_v20  ;;  %v3176_v19 = vpop.f32.mrb[27].mxu1  ;;  %v1295_v25 = vadd.f32 %v1289_v10, %v4075_v36  ;;  %v2776_v10 = vld [vmem:[%s4557_s18] ss:$0 sm:$0xff] }
 0x92b   :  { %1299 = vadd.xlane.f32.xlu0 %v1295_v25  ;;  %v1296_v34 = vadd.f32 %v1292_v18, %v4077_v45 }
 0x92d   :  { %1301 = vadd.xlane.f32.xlu1 %v1296_v34 }
 0x9b8   :  { %v1300_v36 = vpop.xlane.xlu0 %1299 }
 0x9b9   :  { %v1303_v45 = vmul.f32 0.03125, %v1300_v36 }
 0x9ba   :  { %v1302_v24 = vpop.xlane.xlu1 %1301 }
 0x9bb   :  { %v1305_v26 = vsub.f32 %v1295_v25, %v1303_v45  ;;  %v1304_v28 = vmul.f32 0.03125, %v1302_v24  ;;  %v2809_v25 = vld [vmem:[%s4547_s8 + $0x3] sm:$0x7] }
 0x9bc   :  { %v1387_v44 = vrot.slane %v2809_v25, %v168_v60  ;;  %v1383_v22 = vrot.slane %v2809_v25, %v164_v61 }
 0x9bd   :  { %v1306_v37 = vsub.f32 %v1296_v34, %v1304_v28  ;;  %v1307_v33 = vmul.f32 %v3733_v9, %v1305_v26  ;;  %v1379_v34 = vrot.slane %v2809_v25, %v160_v58 }
 0x9bf   :  { %v1309_v46 = vmul.f32 %v1307_v33, %v1307_v33  ;;  %v1308_v29 = vmul.f32 %v3733_v9, %v1306_v37  ;;  %v3429_v9 = vld [vmem:[%s4546_s7 + $0x10c] ss:$12 sps:$4 sm:$0xff]  }
 0x9c0   :  { %1525 = vmatprep.subr.bf16.mxu0 %v3429_v9 }
 0x9c1   :  { %1311 = vadd.xlane.f32.xlu0 %v1309_v46  ;;  %v1310_v30 = vmul.f32 %v1308_v29, %v1308_v29  ;;  %1526 = vmatpush1.bf16.msra.mxu0 %v3427_v38 }
 0x9c2   :  { %1527 = vmatprep.subr.bf16.mxu0 %v3433_v40 }
 0x9c3   :  { %1313 = vadd.xlane.f32.xlu1 %v1310_v30 }
 0x9c5   :  { %1528 = vmatpush1.bf16.msra.mxu0 %v3431_v41 }
 0x9c6   :  { %1529 = vmatprep.subr.bf16.mxu0 %v3437_v43 }
 0x9c9   :  { %1530 = vmatpush1.bf16.msra.mxu0 %v3435_v47 }
 0x9ca   :  { %1531 = vmatprep.subr.bf16.mxu0 %v3441_v49 }
 0x9cd   :  { %1532 = vmatpush1.bf16.msra.mxu0 %v3439_v50 }
 0x9ce   :  { %1533 = vmatprep.subr.bf16.mxu0 %v3445_v51 }
 0x9d1   :  { %1534 = vmatpush1.bf16.msra.mxu0 %v3443_v52 }
 0x9d2   :  { %3197 = vmatprep.subr.bf16.mxu0 %v3596_v4 }
 0xa4e   :  { %v1312_v55 = vpop.xlane.xlu0 %1311 }
 0xa4f   :  { %v1315_v56 = vmul.f32 0.03125, %v1312_v55 }
 0xa50   :  { %v1314_v59 = vpop.xlane.xlu1 %1313 }
 0xa51   :  { %v1317_v63 = vadd.f32 1e-12, %v1315_v56  ;;  %v1316_v0 = vmul.f32 0.03125, %v1314_v59 }
 0xa53   :  { %3523 = vrsqrt.f32 %v1317_v63  ;;  %v1318_v2 = vadd.f32 1e-12, %v1316_v0 }
 0xa55   :  { %3525 = vrsqrt.f32 %v1318_v2 }
 0xa5d   :  { %v3524_v8 = vpop.eup %3523 }
 0xa5e   :  { %v1321_v15 = vmul.f32 %v3524_v8, %v1307_v33 }
 0xa5f   :  { %v3526_v16 = vpop.eup %3525 }
 0xa60   :  { %v1322_v17 = vmul.f32 %v3526_v16, %v1308_v29  ;;  %v1329_v3 = vmul.f32 %v2775_v13, %v1321_v15 }
 0xa62   :  { %v1330_v12 = vmul.f32 %v2775_v13, %v1322_v17  ;;  %v4213_v20 = vadd.f32 %v2776_v10, %v1329_v3 }
 0xa64   :  { %v4215_v18 = vadd.f32 %v2776_v10, %v1330_v12 }
 0xa66   :  { %v1372_v19 = vpack.c.bf16 %v4215_v18, %v4213_v20 }
 0xa68   :  { %1552 = vmatmul.mubr.bf16.vlgmr.msra.gmra.mrb[12].mxu0 %v1372_v19  ;;  %3194 = vmatmul.mubr.bf16.vlgmr.msra.gmra.mrb[28].mxu1 %v1372_v19 }
 0xa69   :  { %3199 = vmatprep.mubr.msk.bf16.mxu0 %vm3598_vm0, %v3596_v4  ;;  %3223 = vmatprep.mubr.msk.bf16.mxu1 %vm3598_vm0, %v3596_v4 }
 0xb3b   :  { %v1553_v14 = vpop.f32.mrb[12].mxu0  ;;  %v1596_v21 = vpop.f32.mrb[28].mxu1 }
 0xb3c   :  { %v1554_v23 = vadd.f32 %v1553_v14, %v1379_v34  ;;  %v1555_v27 = vpop.f32.mrb[13].mxu0  ;;  %v3195_v36 = vpop.f32.mrb[29].mxu1  ;;  %v1597_v45 = vadd.f32 %v1596_v21, %v1387_v44 }
 0xb3d   :  { %v1557_v24 = vpop.f32.mrb[14].mxu0  ;;  %v1599_v26 = vpop.f32.mrb[30].mxu1  ;;  %v1556_v60 = vadd.f32 %v1555_v27, %v1383_v22 }
 0xb3e   :  { %v1559_v28 = vpop.f32.mrb[15].mxu0  ;;  %v3196_v37 = vpop.f32.mrb[31].mxu1  ;;  %v1604_v33 = vmul.f32 %v3849_v1, %v1554_v23  ;;  %v1678_v58 = vmul.f32 %v3856_v6, %v1554_v23  ;;  %v1840_v46 = vmul.f32 %v3861_v7, %v1554_v23  ;;  %v1960_v29 = vmul.f32 %v3866_v11, %v1554_v23 }
 0xb3f   :  { %v1558_v30 = vadd.f32 %v1557_v24, %v1379_v34  ;;  %v1600_v57 = vadd.f32 %v1599_v26, %v1387_v44  ;;  %v1560_v61 = vadd.f32 %v1559_v28, %v1383_v22  ;;  %v4237_v31 = vmul.f32 %v3849_v1, %v1597_v45 }
 0xb40   :  { %v1748_v32 = vmul.f32 %v3856_v6, %v1597_v45  ;;  %v4241_v35 = vmul.f32 %v3861_v7, %v1597_v45  ;;  %v4244_v9 = vmul.f32 %v3866_v11, %v1597_v45 }
 0xb41   :  { %v1605_v38 = vmul.f32 %v3849_v1, %v1558_v30  ;;  %v1679_v39 = vmul.f32 %v3856_v6, %v1558_v30  ;;  %v1841_v40 = vmul.f32 %v3861_v7, %v1558_v30  ;;  %v1961_v41 = vmul.f32 %v3866_v11, %v1558_v30 }
 0xb42   :  { %v4251_v42 = vmul.f32 %v3849_v1, %v1600_v57  ;;  %v1749_v43 = vmul.f32 %v3856_v6, %v1600_v57  ;;  %v4255_v47 = vmul.f32 %v3861_v7, %v1600_v57  ;;  %v4258_v48 = vmul.f32 %v3866_v11, %v1600_v57 }
 0xb43   :  { %v1603_v49 = vpack.c.bf16 %v1560_v61, %v1556_v60  ;;  %v1606_v50 = vpack.c.bf16 %v1605_v38, %v1604_v33  ;;  %v1842_v53 = vpack.c.bf16 %v1841_v40, %v1840_v46  ;;  %v1680_v51 = vpack.c.bf16 %v1679_v39, %v1678_v58 }
 0xb44   :  { %v1962_v52 = vpack.c.bf16 %v1961_v41, %v1960_v29  ;;  %v1750_v54 = vpack.c.bf16 %v1749_v43, %v1748_v32  ;;  %v1676_v55 = vpack.c.bf16 %v4251_v42, %v4237_v31  ;;  %v1912_v1 = vpack.c.bf16 %v4255_v47, %v4241_v35 }
 0xb45   :  { %3198 = vmatpush3.bf16.xpose.msra.mxu0 %v1603_v49  ;;  %3222 = vmatpush3.bf16.xpose.msra.mxu1 %v1603_v49  ;;  %v2032_v6 = vpack.c.bf16 %v4258_v48, %v4244_v9  ;;  %v3454_v9 = vld [vmem:[%s4548_s9 + $0x78] sm:$0xff]  }
 0xb46   :  { %3203 = vmatprep.subr.bf16.mxu0 %v3596_v4  ;;  %3233 = vmatprep.subr.bf16.mxu1 %v3596_v4 }
 0xb4c   :  { %3200 = vmatmul.mubr.bf16.vlgmr.msra.gmra.mrb[16].mxu0 %v1606_v50  ;;  %3224 = vmatmul.mubr.bf16.vlgmr.msra.gmra.mrb[32].mxu1 %v1842_v53 }
 0xb4d   :  { %3204 = vmatpush3.bf16.xpose.msra.mxu0 %v1603_v49  ;;  %3234 = vmatpush3.bf16.xpose.msra.mxu1 %v1603_v49 }
 0xb4e   :  { %3205 = vmatprep.mubr.msk.bf16.mxu0 %vm3598_vm0, %v3596_v4  ;;  %3235 = vmatprep.mubr.msk.bf16.mxu1 %vm3598_vm0, %v3596_v4 }
 0xb4f   :  { %3209 = vmatprep.subr.bf16.mxu0 %v3596_v4  ;;  %3245 = vmatprep.subr.bf16.mxu1 %v3596_v4 }
 0xb54   :  { %3206 = vmatmul.mubr.bf16.vlgmr.msra.gmra.mrb[20].mxu0 %v1680_v51  ;;  %3236 = vmatmul.mubr.bf16.vlgmr.msra.gmra.mrb[36].mxu1 %v1962_v52 }
 0xb55   :  { %3210 = vmatpush3.bf16.msra.mxu0 %v1750_v54  ;;  %3211 = vmatprep.mubr.msk.bf16.mxu0 %vm3598_vm0, %v3596_v4 }
 0xb56   :  { %3215 = vmatprep.subr.bf16.mxu0 %v3596_v4  ;;  %3261 = vmatprep.mubr.msk.bf16.mxu1 %vm3598_vm0, %v3596_v4 }
 0xc1f   :  { %v1641_v7 = vpop.f32.mrb[16].mxu0  ;;  %v1877_v11 = vpop.f32.mrb[32].mxu1 }
 0xc20   :  { %v3201_v56 = vpop.f32.mrb[17].mxu0  ;;  %v3225_v59 = vpop.f32.mrb[33].mxu1  ;;  %v1648_v16 = vmul.f32 0.35355338, %v1641_v7  ;;  %v1884_v22 = vmul.f32 0.35355338, %v1877_v11 }
 0xc21   :  { %v1644_v63 = vpop.f32.mrb[18].mxu0  ;;  %v1880_v0 = vpop.f32.mrb[34].mxu1 }
 0xc22   :  { %v3202_v2 = vpop.f32.mrb[19].mxu0  ;;  %v3226_v8 = vpop.f32.mrb[35].mxu1  ;;  %v1649_v25 = vmul.f32 0.35355338, %v1644_v63  ;;  %v1650_v36 = vadd.f32 %v1648_v16, %v3918_v62  ;;  %v1885_v45 = vmul.f32 0.35355338, %v1880_v0  ;;  %v1886_v33 = vadd.f32 %v1884_v22, %v3918_v62 }
 0xc24   :  { %v1651_v26 = vadd.f32 %v1649_v25, %v3924_v5  ;;  %v1652_v37 = vsel %vm441_vm1, %v1650_v36, -inf  ;;  %v1887_v60 = vadd.f32 %v1885_v45, %v3924_v5  ;;  %v1888_v29 = vsel %vm441_vm1, %v1886_v33, -inf }
 0xc26   :  { %v1655_v46 = vsel %vm441_vm1, %v1651_v26, -inf  ;;  %v1891_v57 = vsel %vm441_vm1, %v1887_v60, -inf }
 0xc27   :  { %v1715_v13 = vpop.f32.mrb[20].mxu0  ;;  %v1997_v15 = vpop.f32.mrb[36].mxu1 }
 0xc28   :  { %v1722_v17 = vmul.f32 0.35355338, %v1715_v13  ;;  %v3207_v3 = vpop.f32.mrb[21].mxu0  ;;  %v3237_v10 = vpop.f32.mrb[37].mxu1  ;;  %v2004_v28 = vmul.f32 0.35355338, %v1997_v15 }
 0xc29   :  { %v1718_v12 = vpop.f32.mrb[22].mxu0  ;;  %v2000_v19 = vpop.f32.mrb[38].mxu1 }
 0xc2a   :  { %v1723_v34 = vmul.f32 0.35355338, %v1718_v12  ;;  %v3208_v44 = vpop.f32.mrb[23].mxu0  ;;  %v3238_v14 = vpop.f32.mrb[39].mxu1  ;;  %v1724_v21 = vadd.f32 %v1722_v17, %v3918_v62  ;;  %v2005_v58 = vmul.f32 0.35355338, %v2000_v19  ;;  %v2006_v30 = vadd.f32 %v2004_v28, %v3918_v62 }
 0xc2b   :  { %v3447_v28 = vld [vmem:[%s4548_s9 + $0x40] sm:$0xff]  }
 0xc2c   :  { %v1726_v23 = vsel %vm441_vm1, %v1724_v21, -inf  ;;  %v1725_v27 = vadd.f32 %v1723_v34, %v3924_v5  ;;  %v2007_v61 = vadd.f32 %v2005_v58, %v3924_v5  ;;  %v2008_v32 = vsel %vm441_vm1, %v2006_v30, -inf  ;;  %3246 = vmatpush3.bf16.msra.mxu1 %v3447_v28  ;;  %v3450_v58 = vld [vmem:[%s4548_s9 + $0x58] sm:$0xff]   ;;  %v3457_v28 = vld [vmem:[%s4552_s13 + $0x50] sm:$0xff]  }
 0xc2d   :  { %1727 = vmax.xlane.f32.xlu0 %v1726_v23  ;;  %3247 = vmatprep.subr.bf16.mxu1 %v3596_v4 }
 0xc2e   :  { %v1729_v24 = vsel %vm441_vm1, %v1725_v27, -inf  ;;  %v2011_v38 = vsel %vm441_vm1, %v2007_v61, -inf }
 0xc2f   :  { %1730 = vmax.xlane.f32.xlu1 %v1729_v24 }
 0xc31   :  { %1653 = vmax.xlane.f32.xlu0 %v1652_v37  ;;  %v3448_v37 = vld [vmem:[%s4548_s9 + $0x48] sm:$0xff]  }
 0xc32   :  { %3248 = vmatpush3.bf16.msra.mxu1 %v3448_v37  ;;  %v3458_v37 = vld [vmem:[%s4552_s13 + $0x58] sm:$0xff]  }
 0xc33   :  { %1656 = vmax.xlane.f32.xlu1 %v1655_v46  ;;  %3249 = vmatprep.subr.bf16.mxu1 %v3596_v4  ;;  %v3451_v46 = vld [vmem:[%s4548_s9 + $0x60] sm:$0xff]  }
 0xc35   :  { %1889 = vmax.xlane.f32.xlu0 %v1888_v29  ;;  %v3453_v29 = vld [vmem:[%s4548_s9 + $0x70] sm:$0xff]  }
 0xc37   :  { %1892 = vmax.xlane.f32.xlu1 %v1891_v57 }
 0xc39   :  { %2009 = vmax.xlane.f32.xlu0 %v2008_v32 }
 0xc3b   :  { %2012 = vmax.xlane.f32.xlu1 %v2011_v38 }
 0xcba   :  { %v1728_v39 = vpop.xlane.xlu0 %1727 }
 0xcbb   :  { %v1732_v40 = vsub.f32 %v1724_v21, %v1728_v39 }
 0xcbc   :  { %v1731_v41 = vpop.xlane.xlu1 %1730 }
 0xcbd   :  { %v1734_v43 = vmul.f32 1.442695, %v1732_v40  ;;  %v1733_v49 = vsub.f32 %v1725_v27, %v1731_v41 }
 0xcbe   :  { %v1654_v50 = vpop.xlane.xlu0 %1653 }
 0xcbf   :  { %3527 = vpow2.f32 %v1734_v43  ;;  %v1736_v62 = vmul.f32 1.442695, %v1733_v49  ;;  %v1658_v53 = vsub.f32 %v1650_v36, %v1654_v50 }
 0xcc0   :  { %v1657_v51 = vpop.xlane.xlu1 %1656 }
 0xcc1   :  { %3529 = vpow2.f32 %v1736_v62  ;;  %v1660_v52 = vmul.f32 1.442695, %v1658_v53  ;;  %v1659_v5 = vsub.f32 %v1651_v26, %v1657_v51 }
 0xcc2   :  { %v1890_v54 = vpop.xlane.xlu0 %1889 }
 0xcc3   :  { %3531 = vpow2.f32 %v1660_v52  ;;  %v1662_v7 = vmul.f32 1.442695, %v1659_v5  ;;  %v1894_v11 = vsub.f32 %v1886_v33, %v1890_v54  ;;  %v3449_v33 = vld [vmem:[%s4548_s9 + $0x50] sm:$0xff]  }
 0xcc4   :  { %v1893_v56 = vpop.xlane.xlu1 %1892  ;;  %3250 = vmatpush3.bf16.msra.mxu1 %v3449_v33  ;;  %v3459_v33 = vld [vmem:[%s4552_s13 + $0x60] sm:$0xff]  }
 0xcc5   :  { %3533 = vpow2.f32 %v1662_v7  ;;  %v1896_v59 = vmul.f32 1.442695, %v1894_v11  ;;  %v1895_v63 = vsub.f32 %v1887_v60, %v1893_v56  ;;  %3251 = vmatprep.subr.bf16.mxu1 %v3596_v4  ;;  %v3452_v60 = vld [vmem:[%s4548_s9 + $0x68] sm:$0xff]  }
 0xcc6   :  { %v2010_v0 = vpop.xlane.xlu0 %2009 }
 0xcc7   :  { %3535 = vpow2.f32 %v1896_v59  ;;  %v1898_v2 = vmul.f32 1.442695, %v1895_v63  ;;  %v2014_v8 = vsub.f32 %v2006_v30, %v2010_v0 }
 0xcc8   :  { %v2013_v13 = vpop.xlane.xlu1 %2012  ;;  %3252 = vmatpush3.bf16.msra.mxu1 %v3450_v58  ;;  %v3460_v58 = vld [vmem:[%s4552_s13 + $0x68] sm:$0xff]  }
 0xcc9   :  { %v3528_v15 = vpop.eup %3527  ;;  %3537 = vpow2.f32 %v1898_v2  ;;  %v2016_v16 = vmul.f32 1.442695, %v2014_v8  ;;  %v2015_v17 = vsub.f32 %v2007_v61, %v2013_v13  ;;  %3253 = vmatprep.subr.bf16.mxu1 %v3596_v4  ;;  %v2855_v13 = vld [vmem:[%s4549_s10 + $0x1] ss:$0 sm:$0xff] }
 0xcca   :  { %v1738_v3 = vsel %vm441_vm1, %v3528_v15, 0.0 }
 0xccb   :  { %v3530_v10 = vpop.eup %3529  ;;  %3539 = vpow2.f32 %v2016_v16  ;;  %v2018_v12 = vmul.f32 1.442695, %v2015_v17  ;;  %1739 = vadd.xlane.f32.xlu0 %v1738_v3 }
 0xccc   :  { %v1741_v19 = vsel %vm441_vm1, %v3530_v10, 0.0  ;;  %3254 = vmatpush3.bf16.msra.mxu1 %v3451_v46  ;;  %v3461_v46 = vld [vmem:[%s4552_s13 + $0x70] sm:$0xff]  }
 0xccd   :  { %v4297_v25 = vpop.eup %3531  ;;  %3541 = vpow2.f32 %v2018_v12  ;;  %1742 = vadd.xlane.f32.xlu1 %v1741_v19  ;;  %3255 = vmatprep.subr.bf16.mxu1 %v3596_v4 }
 0xcce   :  { %v1664_v34 = vsel %vm441_vm1, %v4297_v25, 0.0 }
 0xccf   :  { %v3534_v44 = vpop.eup %3533  ;;  %1665 = vadd.xlane.f32.xlu0 %v1664_v34  ;;  %v3455_v34 = vld [vmem:[%s4552_s13 + $0x40] sm:$0xff]  }
 0xcd0   :  { %v1667_v14 = vsel %vm441_vm1, %v3534_v44, 0.0  ;;  %3256 = vmatpush3.bf16.msra.mxu1 %v3452_v60  ;;  %v3462_v60 = vld [vmem:[%s4552_s13 + $0x78] sm:$0xff]  }
 0xcd1   :  { %v4302_v21 = vpop.eup %3535  ;;  %1668 = vadd.xlane.f32.xlu1 %v1667_v14  ;;  %3257 = vmatprep.subr.bf16.mxu1 %v3596_v4 }
 0xcd2   :  { %v1900_v22 = vsel %vm441_vm1, %v4302_v21, 0.0 }
 0xcd3   :  { %v4306_v23 = vpop.eup %3537  ;;  %1901 = vadd.xlane.f32.xlu0 %v1900_v22 }
 0xcd4   :  { %v1903_v27 = vsel %vm441_vm1, %v4306_v23, 0.0  ;;  %3258 = vmatpush3.bf16.msra.mxu1 %v3453_v29 }
 0xcd5   :  { %v4310_v36 = vpop.eup %3539  ;;  %1904 = vadd.xlane.f32.xlu1 %v1903_v27  ;;  %3259 = vmatprep.subr.bf16.mxu1 %v3596_v4  ;;  %v4397_v27 = vld [vmem:[%s4572_s2] ss:$0 sm:$0xff] }
 0xcd6   :  { %v2020_v45 = vsel %vm441_vm1, %v4310_v36, 0.0 }
 0xcd7   :  { %v4314_v24 = vpop.eup %3541  ;;  %2021 = vadd.xlane.f32.xlu0 %v2020_v45 }
 0xcd8   :  { %v2023_v26 = vsel %vm441_vm1, %v4314_v24, 0.0  ;;  %3260 = vmatpush3.bf16.msra.mxu1 %v3454_v9 }
 0xcd9   :  { %2024 = vadd.xlane.f32.xlu1 %v2023_v26  ;;  %3285 = vmatprep.subr.bf16.mxu1 %v3596_v4 }
 0xd58   :  { %v1740_v30 = vpop.xlane.xlu0 %1739 }
 0xd59   :  { %3543 = vrcp.f32 %v1740_v30 }
 0xd5a   :  { %v1743_v57 = vpop.xlane.xlu1 %1742 }
 0xd5b   :  { %3545 = vrcp.f32 %v1743_v57 }
 0xd5c   :  { %v1666_v32 = vpop.xlane.xlu0 %1665 }
 0xd5e   :  { %v1669_v61 = vpop.xlane.xlu1 %1668 }
 0xd5f   :  { %3547 = vrcp.f32 %v1669_v61 }
 0xd60   :  { %3549 = vrcp.f32 %v1666_v32  ;;  %v1902_v62 = vpop.xlane.xlu0 %1901 }
 0xd62   :  { %v1905_v49 = vpop.xlane.xlu1 %1904 }
 0xd63   :  { %v3544_v38 = vpop.eup %3543  ;;  %3551 = vrcp.f32 %v1905_v49 }
 0xd64   :  { %v1746_v40 = vmul.f32 %v3544_v38, %v3528_v15  ;;  %3553 = vrcp.f32 %v1902_v62  ;;  %v2867_v62 = vld [vmem:[%s4551_s12 + $0x1] ss:$0 sm:$0xff] }
 0xd65   :  { %v3546_v39 = vpop.eup %3545 }
 0xd66   :  { %v1747_v41 = vmul.f32 %v3546_v39, %v3530_v10  ;;  %v2025_v31 = vpop.xlane.xlu1 %2024 }
 0xd67   :  { %3555 = vrcp.f32 %v2025_v31  ;;  %v3463_v31 = vld [vmem:[%s4554_s15 + $0x40] sm:$0xff]  }
 0xd68   :  { %v1751_v43 = vpack.c.bf16 %v1747_v41, %v1746_v40  ;;  %v2866_v40 = vld [vmem:[%s4550_s11 + $0x1] ss:$0 sm:$0xff]  ;;  %s4576_s11 = sld [smem:[#allocation9_spill]] }
 0xd69   :  { %v3548_v50 = vpop.eup %3547 }
 0xd6a   :  { %3212 = vmatmul.mubr.msk.bf16.vlgmr.msra.gmra.mrb[24].mxu0 %vm441_vm1, %v1751_v43  ;;  %v3550_v53 = vpop.eup %3549  ;;  %v1673_v51 = vmul.f32 %v3548_v50, %v3534_v44  ;;  %v3456_v44 = vld [vmem:[%s4552_s13 + $0x48] sm:$0xff]  }
 0xd6b   :  { %3216 = vmatpush3.bf16.msra.mxu0 %v1676_v55  ;;  %3217 = vmatprep.mubr.msk.bf16.mxu0 %vm3598_vm0, %v3596_v4  ;;  %v1672_v52 = vmul.f32 %v3550_v53, %v4297_v25  ;;  %v2022_v55 = vpop.xlane.xlu0 %2021 }
 0xd6c   :  { %3227 = vmatprep.subr.bf16.mxu0 %v3596_v4  ;;  %3557 = vrcp.f32 %v2022_v55  ;;  %v3465_v55 = vld [vmem:[%s4554_s15 + $0x50] sm:$0xff]  }
 0xd6d   :  { %v1677_v5 = vpack.c.bf16 %v1673_v51, %v1672_v52  ;;  %v3552_v42 = vpop.eup %3551 }
 0xd6e   :  { %v3554_v54 = vpop.eup %3553  ;;  %v1909_v7 = vmul.f32 %v3552_v42, %v4306_v23  ;;  %v3464_v42 = vld [vmem:[%s4554_s15 + $0x48] sm:$0xff]  }
 0xd6f   :  { %v1908_v11 = vmul.f32 %v3554_v54, %v4302_v21  ;;  %v3466_v54 = vld [vmem:[%s4554_s15 + $0x58] sm:$0xff]  }
 0xd71   :  { %v1913_v56 = vpack.c.bf16 %v1909_v7, %v1908_v11  ;;  %v3556_v35 = vpop.eup %3555  ;;  %v3467_v7 = vld [vmem:[%s4554_s15 + $0x60] sm:$0xff]   ;;  %v3468_v11 = vld [vmem:[%s4554_s15 + $0x68] sm:$0xff]  }
 0xd76   :  { %3218 = vmatmul.mubr.msk.bf16.vlgmr.msra.gmra.mrb[24].mxu0 %vm441_vm1, %v1677_v5  ;;  %v3558_v47 = vpop.eup %3557 }
 0xd77   :  { %3228 = vmatpush3.bf16.msra.mxu0 %v1912_v1  ;;  %3229 = vmatprep.mubr.msk.bf16.mxu0 %vm3598_vm0, %v3596_v4  ;;  %v2029_v1 = vmul.f32 %v3556_v35, %v4314_v24  ;;  %v2028_v59 = vmul.f32 %v3558_v47, %v4310_v36  ;;  %v3470_v35 = vld [vmem:[%s4554_s15 + $0x78] sm:$0xff]   ;;  %v2885_v47 = vld [vmem:[%s4553_s14 + $0x1] ss:$0 sm:$0xff]  ;;  %s2700_s14 = sshll.u32 %s3599_s0, 4  ;;  %s2701_s14 = int_to_ptr.vmem [resolvable:$true] %s2700_s14 }
 0xd78   :  { %3239 = vmatprep.subr.bf16.mxu0 %v3596_v4  ;;  %p3577_p1 = scmp.lt.s32.totalorder %s2701_s14, %s2701_s14 }
 0xd79   :  { %v2033_v63 = vpack.c.bf16 %v2029_v1, %v2028_v59 }
 0xd82   :  { %3230 = vmatmul.mubr.msk.bf16.vlgmr.msra.gmra.mrb[24].mxu0 %vm441_vm1, %v1913_v56  ;;  %v3469_v56 = vld [vmem:[%s4554_s15 + $0x70] sm:$0xff]  }
 0xd83   :  { %3240 = vmatpush3.bf16.msra.mxu0 %v2032_v6  ;;  %3241 = vmatprep.mubr.msk.bf16.mxu0 %vm3598_vm0, %v3596_v4 }
 0xd84   :  { %3265 = vmatprep.subr.bf16.mxu0 %v3596_v4 }
 0xd8e   :  { %3242 = vmatmul.mubr.msk.bf16.vlgmr.msra.gmra.mrb[24].mxu0 %vm441_vm1, %v2033_v63 }
 0xd8f   :  { %3281 = vmatprep.mubr.msk.bf16.mxu0 %vm3598_vm0, %v3596_v4  ;;  %3266 = vmatpush3.bf16.msra.mxu0 %v3455_v34 }
 0xd90   :  { %3267 = vmatprep.subr.bf16.mxu0 %v3596_v4 }
 0xd93   :  { %3268 = vmatpush3.bf16.msra.mxu0 %v3456_v44 }
 0xd94   :  { %3269 = vmatprep.subr.bf16.mxu0 %v3596_v4 }
 0xd97   :  { %3270 = vmatpush3.bf16.msra.mxu0 %v3457_v28 }
 0xd98   :  { %3271 = vmatprep.subr.bf16.mxu0 %v3596_v4 }
 0xd9b   :  { %3272 = vmatpush3.bf16.msra.mxu0 %v3458_v37 }
 0xd9c   :  { %3273 = vmatprep.subr.bf16.mxu0 %v3596_v4 }
 0xd9f   :  { %3274 = vmatpush3.bf16.msra.mxu0 %v3459_v33 }
 0xda0   :  { %3275 = vmatprep.subr.bf16.mxu0 %v3596_v4 }
 0xda3   :  { %3276 = vmatpush3.bf16.msra.mxu0 %v3460_v58 }
 0xda4   :  { %3277 = vmatprep.subr.bf16.mxu0 %v3596_v4 }
 0xda7   :  { %3278 = vmatpush3.bf16.msra.mxu0 %v3461_v46 }
 0xda8   :  { %3279 = vmatprep.subr.bf16.mxu0 %v3596_v4 }
 0xdab   :  { %3280 = vmatpush3.bf16.msra.mxu0 %v3462_v60 }
 0xdac   :  { %3305 = vmatprep.subr.bf16.mxu0 %v3596_v4 }
 0xe61   :  { %v2071_v48 = vpop.f32.mrb[24].mxu0 }
 0xe62   :  { %v3243_v6 = vpop.f32.mrb[25].mxu0 }
 0xe63   :  { %v2074_v0 = vpop.f32.mrb[26].mxu0 }
 0xe64   :  { %v2097_v2 = vpack.c.bf16 %v2074_v0, %v2071_v48  ;;  %v3244_v8 = vpop.f32.mrb[27].mxu0 }
 0xe66   :  { %3262 = vmatmul.mubr.bf16.vlgmr.msra.gmra.mrb[40].mxu1 %v2097_v2 }
 0xe67   :  { %3301 = vmatprep.mubr.msk.bf16.mxu1 %vm3598_vm0, %v3596_v4  ;;  %3286 = vmatpush3.bf16.msra.mxu1 %v3463_v31 }
 0xe68   :  { %3287 = vmatprep.subr.bf16.mxu1 %v3596_v4 }
 0xe6b   :  { %3288 = vmatpush3.bf16.msra.mxu1 %v3464_v42 }
 0xe6c   :  { %3289 = vmatprep.subr.bf16.mxu1 %v3596_v4 }
 0xe6f   :  { %3290 = vmatpush3.bf16.msra.mxu1 %v3465_v55  ;;  %v2923_v55 = vld [vmem:[%s4557_s18 + $0x1] ss:$0 sm:$0xff] }
 0xe70   :  { %3291 = vmatprep.subr.bf16.mxu1 %v3596_v4 }
 0xe73   :  { %3292 = vmatpush3.bf16.msra.mxu1 %v3466_v54 }
 0xe74   :  { %3293 = vmatprep.subr.bf16.mxu1 %v3596_v4 }
 0xe77   :  { %3294 = vmatpush3.bf16.msra.mxu1 %v3467_v7 }
 0xe78   :  { %3295 = vmatprep.subr.bf16.mxu1 %v3596_v4 }
 0xe7b   :  { %3296 = vmatpush3.bf16.msra.mxu1 %v3468_v11 }
 0xe7c   :  { %3297 = vmatprep.subr.bf16.mxu1 %v3596_v4 }
 0xe7f   :  { %3298 = vmatpush3.bf16.msra.mxu1 %v3469_v56  ;;  %v2535_v56 = vld [vmem:[%s4576_s11] sm:$0x3] }
 0xe80   :  { %3299 = vmatprep.subr.bf16.mxu1 %v3596_v4 }
 0xe83   :  { %3300 = vmatpush3.bf16.msra.mxu1 %v3470_v35 }
 0xf39   :  { %v2188_v15 = vpop.f32.mrb[40].mxu1 }
 0xf3a   :  { %v2189_v16 = vadd.f32 %v2855_v13, %v2188_v15  ;;  %v3263_v17 = vpop.f32.mrb[41].mxu1 }
 0xf3b   :  { %v2191_v3 = vpop.f32.mrb[42].mxu1 }
 0xf3c   :  { %v2192_v10 = vadd.f32 %v2855_v13, %v2191_v3  ;;  %v3264_v12 = vpop.f32.mrb[43].mxu1  ;;  %v2195_v19 = vadd.f32 %v2189_v16, %v4213_v20 }
 0xf3e   :  { %2201 = vadd.xlane.f32.xlu0 %v2195_v19  ;;  %v2196_v25 = vadd.f32 %v2192_v10, %v4215_v18 }
 0xf40   :  { %2203 = vadd.xlane.f32.xlu1 %v2196_v25 }
 0xfcb   :  { %v2202_v14 = vpop.xlane.xlu0 %2201 }
 0xfcc   :  { %v2205_v20 = vmul.f32 0.03125, %v2202_v14 }
 0xfcd   :  { %v2204_v21 = vpop.xlane.xlu1 %2203 }
 0xfce   :  { %v2207_v22 = vsub.f32 %v2195_v19, %v2205_v20  ;;  %v2206_v18 = vmul.f32 0.03125, %v2204_v21 }
 0xfd0   :  { %v2208_v23 = vsub.f32 %v2196_v25, %v2206_v18  ;;  %v2209_v36 = vmul.f32 %v4397_v27, %v2207_v22 }
 0xfd2   :  { %v2211_v45 = vmul.f32 %v2209_v36, %v2209_v36  ;;  %v2210_v24 = vmul.f32 %v4397_v27, %v2208_v23  ;;  %v2911_v23 = vld [vmem:[%s4555_s16 + $0x1] ss:$0 sm:$0xff] }
 0xfd4   :  { %2213 = vadd.xlane.f32.xlu0 %v2211_v45  ;;  %v2212_v26 = vmul.f32 %v2210_v24, %v2210_v24 }
 0xfd6   :  { %2215 = vadd.xlane.f32.xlu1 %v2212_v26 }
0x1061   :  { %v2214_v29 = vpop.xlane.xlu0 %2213 }
0x1062   :  { %v2217_v30 = vmul.f32 0.03125, %v2214_v29 }
0x1063   :  { %v2216_v57 = vpop.xlane.xlu1 %2215 }
0x1064   :  { %v2219_v61 = vadd.f32 1e-12, %v2217_v30  ;;  %v2218_v32 = vmul.f32 0.03125, %v2216_v57 }
0x1066   :  { %3559 = vrsqrt.f32 %v2219_v61  ;;  %v2220_v38 = vadd.f32 1e-12, %v2218_v32 }
0x1068   :  { %3561 = vrsqrt.f32 %v2220_v38 }
0x1070   :  { %v3560_v39 = vpop.eup %3559 }
0x1071   :  { %v2223_v41 = vmul.f32 %v3560_v39, %v2209_v36 }
0x1072   :  { %v3562_v43 = vpop.eup %3561 }
0x1073   :  { %v2224_v49 = vmul.f32 %v3562_v43, %v2210_v24  ;;  %v2231_v50 = vmul.f32 %v2866_v40, %v2223_v41 }
0x1075   :  { %v2232_v53 = vmul.f32 %v2866_v40, %v2224_v49  ;;  %v4431_v51 = vadd.f32 %v2867_v62, %v2231_v50 }
0x1077   :  { %v4433_v52 = vadd.f32 %v2867_v62, %v2232_v53 }
0x1079   :  { %v2258_v5 = vpack.c.bf16 %v4433_v52, %v4431_v51 }
0x107b   :  { %3282 = vmatmul.mubr.bf16.vlgmr.msra.gmra.mrb[28].mxu0 %v2258_v5 }
0x107c   :  { %3307 = vmatprep.mubr.msk.bf16.mxu0 %vm3598_vm0, %v3596_v4 }
0x114e   :  { %v2349_v1 = vpop.f32.mrb[28].mxu0 }
0x114f   :  { %v2350_v59 = vadd.f32 %v2885_v47, %v2349_v1  ;;  %v3283_v63 = vpop.f32.mrb[29].mxu0  ;;  %v3471_v1 = vld [vmem:[%s4558_s19] sm:$0xff]  }
0x1150   :  { %v2352_v9 = vpop.f32.mrb[30].mxu0  ;;  %v3473_v63 = vld [vmem:[%s4558_s19 + $0x10] sm:$0xff]  }
0x1151   :  { %v2358_v48 = vmul.f32 0.044715, %v2350_v59  ;;  %v2353_v6 = vadd.f32 %v2885_v47, %v2352_v9  ;;  %v3284_v0 = vpop.f32.mrb[31].mxu0  ;;  %v2356_v44 = vmul.f32 0.5, %v2350_v59  ;;  %v2536_v47 = vpack.c.bf16 %v2535_v56, %v2535_v56  ;;  %v3474_v9 = vld [vmem:[%s4558_s19 + $0x18] sm:$0xff]  }
0x1152   :  { %v3477_v0 = vld [vmem:[%s4558_s19 + $0x30] sm:$0xff]  }
0x1153   :  { %v2360_v2 = vmul.f32 %v2358_v48, %v2350_v59  ;;  %v2359_v8 = vmul.f32 0.044715, %v2353_v6  ;;  %v2357_v14 = vmul.f32 0.5, %v2353_v6  ;;  %v3475_v48 = vld [vmem:[%s4558_s19 + $0x20] sm:$0xff]  }
0x1155   :  { %v2362_v13 = vmul.f32 %v2360_v2, %v2350_v59  ;;  %v2361_v15 = vmul.f32 %v2359_v8, %v2353_v6  ;;  %v3478_v2 = vld [vmem:[%s4558_s19 + $0x38] sm:$0xff]  }
0x1157   :  { %v2364_v16 = vadd.f32 %v2362_v13, %v2350_v59  ;;  %v2363_v17 = vmul.f32 %v2361_v15, %v2353_v6  ;;  %v3472_v59 = vld [vmem:[%s4558_s19 + $0x8] sm:$0xff]  }
0x1159   :  { %v2366_v3 = vmul.f32 0.7978846, %v2364_v16  ;;  %v2365_v10 = vadd.f32 %v2363_v17, %v2353_v6  ;;  %v3476_v6 = vld [vmem:[%s4558_s19 + $0x28] sm:$0xff]   ;;  %s3572_s19 = scalar_lea.vmem %s2701_s14, 32 }
0x115a   :  { %p3573_p0 = scmp.ne.s32.totalorder %s2701_s14, %s3572_s19  ;;  %p3578_p2 = scmp.lt.s32.totalorder %s3572_s19, %s3572_s19 }
0x115b   :  { %3563 = vtanh.f32 %v2366_v3  ;;  %v2367_v12 = vmul.f32 0.7978846, %v2365_v10  ;;  %v2925_v3 = vld [vmem:[%s4559_s20] ss:$0 sm:$0xff] }
0x115c   :  { %p3579_p3 = por %p3578_p2, %p3577_p1 }
0x115d   :  { %3565 = vtanh.f32 %v2367_v12 }
0x115e   :  { %p3580_p4 = pnand %p3579_p3, %p3573_p0 }
0x1165   :  { %v3564_v19 = vpop.eup %3563 }
0x1166   :  { %v2370_v25 = vadd.f32 1.0, %v3564_v19 }
0x1167   :  { %v3566_v34 = vpop.eup %3565 }
0x1168   :  { %v2371_v20 = vadd.f32 1.0, %v3566_v34  ;;  %v2372_v21 = vmul.f32 %v2370_v25, %v2356_v44 }
0x116a   :  { %v2373_v22 = vmul.f32 %v2371_v20, %v2357_v14 }
0x116c   :  { %v2391_v18 = vpack.c.bf16 %v2373_v22, %v2372_v21 }
0x116e   :  { %3302 = vmatmul.mubr.bf16.vlgmr.msra.gmra.mrb[44].mxu1 %v2391_v18 }
0x1241   :  { %v2482_v36 = vpop.f32.mrb[44].mxu1 }
0x1242   :  { %v2483_v45 = vadd.f32 %v2911_v23, %v2482_v36  ;;  %v3303_v24 = vpop.f32.mrb[45].mxu1 }
0x1243   :  { %v2485_v26 = vpop.f32.mrb[46].mxu1 }
0x1244   :  { %v2486_v28 = vadd.f32 %v2911_v23, %v2485_v26  ;;  %v3304_v37 = vpop.f32.mrb[47].mxu1  ;;  %v2489_v33 = vadd.f32 %v2483_v45, %v4431_v51 }
0x1246   :  { %2495 = vadd.xlane.f32.xlu0 %v2489_v33  ;;  %v2490_v58 = vadd.f32 %v2486_v28, %v4433_v52  ;;  %v2922_v52 = vld [vmem:[%s4556_s17 + $0x1] ss:$0 sm:$0xff] }
0x1248   :  { %2497 = vadd.xlane.f32.xlu1 %v2490_v58 }
0x12d3   :  { %v2496_v46 = vpop.xlane.xlu0 %2495 }
0x12d4   :  { %v2499_v60 = vmul.f32 0.03125, %v2496_v46 }
0x12d5   :  { %v2498_v29 = vpop.xlane.xlu1 %2497 }
0x12d6   :  { %v2501_v30 = vsub.f32 %v2489_v33, %v2499_v60  ;;  %v2500_v57 = vmul.f32 0.03125, %v2498_v29 }
0x12d8   :  { %v2502_v61 = vsub.f32 %v2490_v58, %v2500_v57  ;;  %v2503_v32 = vmul.f32 %v4397_v27, %v2501_v30 }
0x12da   :  { %v2505_v38 = vmul.f32 %v2503_v32, %v2503_v32  ;;  %v2504_v39 = vmul.f32 %v4397_v27, %v2502_v61 }
0x12dc   :  { %2507 = vadd.xlane.f32.xlu0 %v2505_v38  ;;  %v2506_v40 = vmul.f32 %v2504_v39, %v2504_v39 }
0x12de   :  { %2509 = vadd.xlane.f32.xlu1 %v2506_v40 }
0x1369   :  { %v2508_v41 = vpop.xlane.xlu0 %2507 }
0x136a   :  { %v2511_v43 = vmul.f32 0.03125, %v2508_v41 }
0x136b   :  { %v2510_v49 = vpop.xlane.xlu1 %2509 }
0x136c   :  { %v2513_v50 = vadd.f32 1e-12, %v2511_v43  ;;  %v2512_v62 = vmul.f32 0.03125, %v2510_v49 }
0x136e   :  { %3567 = vrsqrt.f32 %v2513_v50  ;;  %v2514_v53 = vadd.f32 1e-12, %v2512_v62 }
0x1370   :  { %3569 = vrsqrt.f32 %v2514_v53 }
0x1378   :  { %v3568_v51 = vpop.eup %3567 }
0x1379   :  { %v2517_v5 = vmul.f32 %v3568_v51, %v2503_v32 }
0x137a   :  { %v3570_v31 = vpop.eup %3569 }
0x137b   :  { %v2518_v42 = vmul.f32 %v3570_v31, %v2504_v39  ;;  %v2525_v27 = vmul.f32 %v2922_v52, %v2517_v5 }
0x137d   :  { %v2526_v54 = vmul.f32 %v2922_v52, %v2518_v42  ;;  %v2533_v7 = vadd.f32 %v2923_v55, %v2525_v27 }
0x137f   :  { %v2534_v11 = vadd.f32 %v2923_v55, %v2526_v54 }
0x1381   :  { %v2537_v35 = vpack.c.bf16 %v2534_v11, %v2533_v7 }
0x1383   :  { %3306 = vmatpush3.bf16.msra.mxu0 %v2537_v35 }
0x1384   :  { %3311 = vmatprep.subr.bf16.mxu0 %v3596_v4 }
0x1386   :  { %3308 = vmatmul.mubr.msk.bf16.vlgmr.msra.gmra.mrb[32].mxu0 %vm441_vm1, %v2536_v47 }
0x1387   :  { %3312 = vmatpush3.bf16.msra.mxu0 %v3471_v1  ;;  %3327 = vmatprep.mubr.msk.bf16.mxu0 %vm3598_vm0, %v3596_v4 }
0x1388   :  { %3313 = vmatprep.subr.bf16.mxu0 %v3596_v4 }
0x138b   :  { %3314 = vmatpush3.bf16.msra.mxu0 %v3472_v59 }
0x138c   :  { %3315 = vmatprep.subr.bf16.mxu0 %v3596_v4 }
0x138f   :  { %3316 = vmatpush3.bf16.msra.mxu0 %v3473_v63 }
0x1390   :  { %3317 = vmatprep.subr.bf16.mxu0 %v3596_v4 }
0x1393   :  { %3318 = vmatpush3.bf16.msra.mxu0 %v3474_v9 }
0x1394   :  { %3319 = vmatprep.subr.bf16.mxu0 %v3596_v4 }
0x1397   :  { %3320 = vmatpush3.bf16.msra.mxu0 %v3475_v48 }
0x1398   :  { %3321 = vmatprep.subr.bf16.mxu0 %v3596_v4 }
0x139b   :  { %3322 = vmatpush3.bf16.msra.mxu0 %v3476_v6 }
0x139c   :  { %3323 = vmatprep.subr.bf16.mxu0 %v3596_v4 }
0x139f   :  { %3324 = vmatpush3.bf16.msra.mxu0 %v3477_v0 }
0x13a0   :  { %3325 = vmatprep.subr.bf16.mxu0 %v3596_v4 }
0x13a3   :  { %3326 = vmatpush3.bf16.msra.mxu0 %v3478_v2 }
0x1459   :  { %v2575_v8 = vpop.f32.mrb[32].mxu0 }
0x145a   :  { %v2597_v13 = vpack.c.bf16 %v2575_v8, %v2575_v8  ;;  %v3309_v15 = vpop.f32.mrb[33].mxu0 }
0x145b   :  { %v2578_v16 = vpop.f32.mrb[34].mxu0 }
0x145c   :  { %v3310_v17 = vpop.f32.mrb[35].mxu0  ;;  %3328 = vmatmul.mubr.bf16.vlgmr.msra.gmra.mrb[36].mxu0 %v2597_v13 }
0x152f   :  { %v2687_v10 = vpop.f32.mrb[36].mxu0 }
0x1530   :  { %v2688_v12 = vadd.f32 %v2925_v3, %v2687_v10  ;;  %v3329_v4 = vpop.f32.mrb[37].mxu0 }
0x1531   :  { %v2690_v19 = vpop.f32.mrb[38].mxu0 }
0x1532   :  { %2693 = vst [vmem:[#allocation2] sm:$0x3] %v2688_v12  ;;  %v3330_v25 = vpop.f32.mrb[39].mxu0 }
0x1533   :  { %3583 = shalt.err (!%p3580_p4)
}
0x1534   :  { %s3584_s20 = scalar_lea.hbm %s4560_s21, 32 }
0x1535   :  { %p3585_p5 = scmp.ne.s32.totalorder %s4560_s21, %s3584_s20  ;;  %p3588_p6 = scmp.lt.u32.totalorder %s3584_s20, %s4560_s21 }
0x1537   :  { %p3590_p7 = pnand %p3588_p6, %p3585_p5 }
0x1539   :  { %3593 = shalt.err (!%p3590_p7)
}
0x153a   :  { %2703 = dma.vmem_to_hbm [thread:$0]  %s2701_s14, 32, %s4560_s21, [#allocation3]  }
0x153b   :  { %3594 = dma.done.wait [#allocation3], 32  }
0x153c   :  { %3595 = vsyncadd [#allocation3], 4294967264 }
0x153d   :  { %2707 = vsyncpa [#allocation3], 1 }

</bundles_post_ra>
